<compile_context>
chip_gen: v7x
topology: tpu7x:2x2x1
jax: 0.10.0
libtpu: 0.0.40
codegen_flags: <defaults>
</compile_context>

<pallas_src>
import functools

import jax
import jax.numpy as jnp
from jax.experimental import pallas as pl
from jax.experimental.pallas import tpu as pltpu


def _round_up(x, m):
    return (x + m - 1) // m * m


# -----------------------------------------------------------------------------
# Fused conv (+ bias [+ InstanceNorm] [+ LeakyReLU]) Pallas kernel
# -----------------------------------------------------------------------------
def _conv_fused_kernel(x_ref, w_ref, b_ref, mask_ref, o_ref, *,
                       n_taps, oh, ow, owp, epilogue, slope, eps):
    # x_ref   : ((oh + n_taps - 1) * owp, K)  bf16  tap-ready rows, one sample
    # w_ref   : (n_taps, K, Coutp)            bf16  per-tap weights (resident)
    # b_ref   : (1, Coutp)                    f32   bias (resident)
    # mask_ref: (oh * owp, 1)                 f32   1.0 on valid output columns
    # o_ref   : (oh * owp, Coutp)                   one sample's output block
    m = oh * owp
    acc = None
    for t in range(n_taps):
        # Row offsets are static multiples of owp (owp % 16 == 0) -> aligned.
        patch = x_ref[t * owp:t * owp + m, :]
        part = jnp.dot(patch, w_ref[t], preferred_element_type=jnp.float32)
        acc = part if acc is None else acc + part
    acc = acc + b_ref[...]

    if epilogue == "instnorm_leaky":
        # InstanceNorm2d(affine=False) over the valid spatial positions
        # (padded columns are excluded from the statistics and discarded by
        # the wrapper), then LeakyReLU(slope).
        mask = mask_ref[...]                          # (m, 1)
        inv_cnt = 1.0 / float(oh * ow)
        mean = jnp.sum(acc * mask, axis=0, keepdims=True) * inv_cnt
        cen = (acc - mean) * mask
        var = jnp.sum(cen * cen, axis=0, keepdims=True) * inv_cnt
        acc = (acc - mean) * jax.lax.rsqrt(var + eps)
        acc = jnp.where(acc >= 0.0, acc, slope * acc)
    elif epilogue == "leaky":
        acc = jnp.where(acc >= 0.0, acc, slope * acc)
    # epilogue == "none": bias only.

    o_ref[...] = acc.astype(o_ref.dtype)


def _conv_pallas(x_rows, w_taps, bias2d, mask, *, n_taps, oh, ow, owp,
                 epilogue, out_dtype, slope=0.2, eps=1e-5):
    n, rows, k = x_rows.shape
    coutp = w_taps.shape[-1]
    m = oh * owp
    kernel = functools.partial(
        _conv_fused_kernel, n_taps=n_taps, oh=oh, ow=ow, owp=owp,
        epilogue=epilogue, slope=slope, eps=eps)
    return pl.pallas_call(
        kernel,
        out_shape=jax.ShapeDtypeStruct((n, m, coutp), out_dtype),
        grid=(n,),
        in_specs=[
            pl.BlockSpec((None, rows, k), lambda i: (i, 0, 0)),
            pl.BlockSpec((n_taps, k, coutp), lambda i: (0, 0, 0)),
            pl.BlockSpec((1, coutp), lambda i: (0, 0)),
            pl.BlockSpec((m, 1), lambda i: (0, 0)),
        ],
        out_specs=pl.BlockSpec((None, m, coutp), lambda i: (i, 0, 0)),
        compiler_params=pltpu.CompilerParams(
            dimension_semantics=("parallel",),
            vmem_limit_bytes=48 * 1024 * 1024),
    )(x_rows, w_taps, bias2d, mask)


# -----------------------------------------------------------------------------
# Layer wrappers: cheap JAX-side re-layout, all compute inside the kernel
# -----------------------------------------------------------------------------
def conv4x4_s2(x_nhwc, w, b, *, epilogue, out_dtype):
    """Conv2d(k=4, stride=2, pad=1) + fused epilogue.  NHWC in / NHWC out."""
    n, h, wdt, c = x_nhwc.shape
    assert h % 2 == 0 and wdt % 2 == 0, "stride-2 path expects even H, W"
    # TODO(synk): odd H/W (PyTorch floor behaviour) would need an extra crop.
    oh, ow = h // 2, wdt // 2
    owp = max(_round_up(ow, 16), 16)       # bf16 sublane-tile aligned width
    cout = w.shape[-1]

    # conv zero-pad of 1 plus extra right pad so the tile-padded width fits.
    xp = jnp.pad(x_nhwc, ((0, 0), (1, 1), (1, 1 + 2 * (owp - ow)), (0, 0)))
    # space-to-depth by the stride: (n, oh+1, owp+1, 4c), channel = (rh, rw, c)
    xp = xp.reshape(n, oh + 1, 2, owp + 1, 2, c)
    xp = jnp.transpose(xp, (0, 1, 3, 2, 4, 5)).reshape(n, oh + 1, owp + 1, 4 * c)
    # fold the two kw phases (aw) into channels: channel = (aw, rh, rw, c)
    xp = jnp.concatenate([xp[:, :, :owp, :], xp[:, :, 1:owp + 1, :]], axis=-1)
    # flatten spatial: row = i*owp + j  ->  (n, (oh+1)*owp, 8c)
    xp = xp.reshape(n, (oh + 1) * owp, 8 * c)

    # weights: (kh, kw) = (2*ah + rh, 2*aw + rw); tap = ah, K = (aw, rh, rw, c)
    wt = w.reshape(2, 2, 2, 2, c, cout)            # (ah, rh, aw, rw, c, o)
    wt = jnp.transpose(wt, (0, 2, 1, 3, 4, 5))     # (ah, aw, rh, rw, c, o)
    wt = wt.reshape(2, 8 * c, cout)

    mask = (jnp.arange(oh * owp, dtype=jnp.int32) % owp < ow)
    mask = mask.astype(jnp.float32).reshape(oh * owp, 1)

    out = _conv_pallas(xp.astype(jnp.bfloat16), wt.astype(jnp.bfloat16),
                       b.reshape(1, cout).astype(jnp.float32), mask,
                       n_taps=2, oh=oh, ow=ow, owp=owp,
                       epilogue=epilogue, out_dtype=out_dtype)
    return out.reshape(n, oh, owp, cout)[:, :, :ow, :]


def conv4x4_s1(x_nhwc, w, b, *, out_dtype):
    """Conv2d(k=4, stride=1, pad=1), bias only; Cout lane-padded to 128."""
    n, h, wdt, c = x_nhwc.shape
    oh, ow = h - 1, wdt - 1
    owp = max(_round_up(ow, 16), 16)
    cout = w.shape[-1]
    coutp = max(_round_up(cout, 128), 128)

    # conv zero-pad of 1 plus extra right pad so 4 shifted kw windows fit.
    xp = jnp.pad(x_nhwc, ((0, 0), (1, 1), (1, owp + 2 - wdt), (0, 0)))
    # fold the 4 kw taps into channels: (n, oh+3, owp, 4c), channel = (kw, c)
    xp = jnp.concatenate([xp[:, :, kw:kw + owp, :] for kw in range(4)], axis=-1)
    xp = xp.reshape(n, (oh + 3) * owp, 4 * c)

    wt = jnp.pad(w.reshape(4, 4 * c, cout), ((0, 0), (0, 0), (0, coutp - cout)))
    bp = jnp.pad(b, (0, coutp - cout)).reshape(1, coutp).astype(jnp.float32)

    mask = (jnp.arange(oh * owp, dtype=jnp.int32) % owp < ow)
    mask = mask.astype(jnp.float32).reshape(oh * owp, 1)

    out = _conv_pallas(xp.astype(jnp.bfloat16), wt.astype(jnp.bfloat16), bp,
                       mask, n_taps=4, oh=oh, ow=ow, owp=owp,
                       epilogue="none", out_dtype=out_dtype)
    return out.reshape(n, oh, owp, coutp)[:, :, :ow, :cout]


# -----------------------------------------------------------------------------
# Discriminator forward (NCHW in / NCHW out, matching the PyTorch module)
# -----------------------------------------------------------------------------
def init_params(key, in_channel, out_channel):
    ks = jax.random.split(key, 8)

    def conv_init(kw_key, kb_key, kh_, kw_, cin, cout):
        fan_in = kh_ * kw_ * cin
        scale = (1.0 / fan_in) ** 0.5
        w = jax.random.uniform(kw_key, (kh_, kw_, cin, cout), jnp.float32,
                               -scale, scale)
        b = jax.random.uniform(kb_key, (cout,), jnp.float32, -scale, scale)
        return w, b

    p = {}
    p["w1"], p["b1"] = conv_init(ks[0], ks[1], 4, 4, in_channel, 32)
    p["w2"], p["b2"] = conv_init(ks[2], ks[3], 4, 4, 32, 64)
    p["w3"], p["b3"] = conv_init(ks[4], ks[5], 4, 4, 64, 128)
    p["w4"], p["b4"] = conv_init(ks[6], ks[7], 4, 4, 128, out_channel)
    return p


def discriminator_forward(x_nchw, params):
    x = jnp.transpose(x_nchw, (0, 2, 3, 1)).astype(jnp.float32)     # -> NHWC
    # Conv(in, 32, 4, 2, 1) + LeakyReLU(0.2)
    x = conv4x4_s2(x, params["w1"], params["b1"],
                   epilogue="leaky", out_dtype=jnp.bfloat16)
    # Conv(32, 64, 4, 2, 1) + InstanceNorm2d(64) + LeakyReLU(0.2)
    x = conv4x4_s2(x, params["w2"], params["b2"],
                   epilogue="instnorm_leaky", out_dtype=jnp.bfloat16)
    # Conv(64, 128, 4, 2, 1) + InstanceNorm2d(128) + LeakyReLU(0.2)
    x = conv4x4_s2(x, params["w3"], params["b3"],
                   epilogue="instnorm_leaky", out_dtype=jnp.bfloat16)
    # Conv(128, out_channel, 4, 1, 1)
    x = conv4x4_s1(x, params["w4"], params["b4"], out_dtype=jnp.float32)
    return jnp.transpose(x, (0, 3, 1, 2))                           # -> NCHW


# -----------------------------------------------------------------------------
# Pure-JAX references.
#   mxu_dtype=bf16 mirrors the kernel's (deliberate) bf16-operand / f32-accum
#   MXU policy; mxu_dtype=f32 is the exact PyTorch-equivalent float path.
# -----------------------------------------------------------------------------
def _ref_forward(x_nchw, params, mxu_dtype=jnp.float32):
    def conv(x, w, b, s, p):
        w_oihw = jnp.transpose(w, (3, 2, 0, 1)).astype(mxu_dtype)
        y = jax.lax.conv_general_dilated(
            x.astype(mxu_dtype), w_oihw, (s, s), ((p, p), (p, p)),
            dimension_numbers=("NCHW", "OIHW", "NCHW"),
            preferred_element_type=jnp.float32)
        return y + b.reshape(1, -1, 1, 1)

    def inorm(x, eps=1e-5):
        m = jnp.mean(x, axis=(2, 3), keepdims=True)
        v = jnp.mean((x - m) ** 2, axis=(2, 3), keepdims=True)
        return (x - m) * jax.lax.rsqrt(v + eps)

    lrelu = lambda t: jnp.where(t >= 0, t, 0.2 * t)
    x = x_nchw.astype(jnp.float32)
    x = lrelu(conv(x, params["w1"], params["b1"], 2, 1))
    x = lrelu(inorm(conv(x, params["w2"], params["b2"], 2, 1)))
    x = lrelu(inorm(conv(x, params["w3"], params["b3"], 2, 1)))
    x = conv(x, params["w4"], params["b4"], 1, 1)
    return x


if __name__ == "__main__":
    key = jax.random.PRNGKey(0)
    k_x, k_p = jax.random.split(key)

    in_channel, out_channel = 4, 1
    x = jax.random.normal(k_x, (2, in_channel, 16, 16), dtype=jnp.float32)
    params = init_params(k_p, in_channel, out_channel)

    fwd = jax.jit(discriminator_forward)
    out = fwd(x, params)
    jax.block_until_ready(out)

    assert out.shape == (2, out_channel, 1, 1), out.shape

    # 1) Matched-precision reference (bf16 MXU operands, f32 accumulation).
    ref_m = _ref_forward(x, params, mxu_dtype=jnp.bfloat16)
    jax.block_until_ready(ref_m)
    assert jnp.allclose(out, ref_m, atol=2e-2, rtol=2e-2), (
        float(jnp.max(jnp.abs(out - ref_m))))

    # 2) Full-f32 reference: the deliberate bf16-operand choice stays within a
    #    few percent of the exact float path.
    ref32 = _ref_forward(x, params, mxu_dtype=jnp.float32)
    jax.block_until_ready(ref32)
    err = float(jnp.max(jnp.abs(out - ref32)))
    scale = float(jnp.max(jnp.abs(ref32)))
    assert err <= 0.1 * max(1.0, scale), (err, scale)

    print("KERNEL_OK")
</pallas_src>

<mosaic_0001>
module attributes {stable_mosaic.version = 11 : i64} {
  func.func @_conv_fused_kernel(%arg0: i32, %arg1: memref<1x144x32xbf16, #tpu.memory_space<vmem>>, %arg2: memref<2x32x32xbf16, #tpu.memory_space<vmem>>, %arg3: memref<1x32xf32, #tpu.memory_space<vmem>>, %arg4: memref<128x1xf32, #tpu.memory_space<vmem>>, %arg5: memref<1x128x32xbf16, #tpu.memory_space<vmem>>) attributes {dimension_semantics = [#tpu.dimension_semantics<parallel>], iteration_bounds = array<i64: 2>, scalar_prefetch = 0 : i64, scratch_operands = 0 : i64, tpu.core_type = #tpu.core_type<tc>, window_params = [{transform_indices = @transform_0, window_bounds = array<i64: 1, 144, 32>}, {pipeline_mode = #tpu.pipeline_mode<synchronous>, transform_indices = @transform_1, window_bounds = array<i64: 2, 32, 32>}, {pipeline_mode = #tpu.pipeline_mode<synchronous>, transform_indices = @transform_2, window_bounds = array<i64: 1, 32>}, {pipeline_mode = #tpu.pipeline_mode<synchronous>, transform_indices = @transform_3, window_bounds = array<i64: 128, 1>}, {transform_indices = @transform_4, window_bounds = array<i64: 1, 128, 32>}]} {
    %c0 = arith.constant 0 : index
    %c0_0 = arith.constant 0 : index
    %c0_1 = arith.constant 0 : index
    %0 = vector.load %arg1[%c0, %c0_0, %c0_1] : memref<1x144x32xbf16, #tpu.memory_space<vmem>>, vector<1x128x32xbf16>
    %1 = vector.shape_cast %0 : vector<1x128x32xbf16> to vector<128x32xbf16>
    %c0_2 = arith.constant 0 : index
    %c0_3 = arith.constant 0 : index
    %c0_4 = arith.constant 0 : index
    %2 = vector.load %arg2[%c0_2, %c0_3, %c0_4] : memref<2x32x32xbf16, #tpu.memory_space<vmem>>, vector<1x32x32xbf16>
    %3 = vector.shape_cast %2 : vector<1x32x32xbf16> to vector<32x32xbf16>
    %cst = arith.constant dense<0.000000e+00> : vector<128x32xf32>
    %4 = tpu.matmul %1, %3, %cst {dimension_numbers = #tpu.dot_dimension_numbers<[1], [0], [0], [1], [0, 0, 1, 1], [], []>} : vector<128x32xbf16>, vector<32x32xbf16>, vector<128x32xf32> -> vector<128x32xf32>
    %c0_5 = arith.constant 0 : index
    %c16 = arith.constant 16 : index
    %c0_6 = arith.constant 0 : index
    %5 = vector.load %arg1[%c0_5, %c16, %c0_6] : memref<1x144x32xbf16, #tpu.memory_space<vmem>>, vector<1x128x32xbf16>
    %6 = vector.shape_cast %5 : vector<1x128x32xbf16> to vector<128x32xbf16>
    %c1 = arith.constant 1 : index
    %c0_7 = arith.constant 0 : index
    %c0_8 = arith.constant 0 : index
    %7 = vector.load %arg2[%c1, %c0_7, %c0_8] : memref<2x32x32xbf16, #tpu.memory_space<vmem>>, vector<1x32x32xbf16>
    %8 = vector.shape_cast %7 : vector<1x32x32xbf16> to vector<32x32xbf16>
    %cst_9 = arith.constant dense<0.000000e+00> : vector<128x32xf32>
    %9 = tpu.matmul %6, %8, %cst_9 {dimension_numbers = #tpu.dot_dimension_numbers<[1], [0], [0], [1], [0, 0, 1, 1], [], []>} : vector<128x32xbf16>, vector<32x32xbf16>, vector<128x32xf32> -> vector<128x32xf32>
    %10 = arith.addf %4, %9 : vector<128x32xf32>
    %c0_10 = arith.constant 0 : index
    %c0_11 = arith.constant 0 : index
    %11 = vector.load %arg3[%c0_10, %c0_11] : memref<1x32xf32, #tpu.memory_space<vmem>>, vector<1x32xf32>
    %12 = vector.broadcast %11 : vector<1x32xf32> to vector<128x32xf32>
    %13 = arith.addf %10, %12 : vector<128x32xf32>
    %cst_12 = arith.constant 0.000000e+00 : f32
    %14 = vector.broadcast %cst_12 : f32 to vector<128x32xf32>
    %15 = arith.cmpf oge, %13, %14 : vector<128x32xf32>
    %cst_13 = arith.constant 2.000000e-01 : f32
    %16 = vector.broadcast %cst_13 : f32 to vector<128x32xf32>
    %17 = arith.mulf %16, %13 : vector<128x32xf32>
    %18 = arith.select %15, %13, %17 : vector<128x32xi1>, vector<128x32xf32>
    %19 = arith.truncf %18 : vector<128x32xf32> to vector<128x32xbf16>
    %c0_14 = arith.constant 0 : index
    %c0_15 = arith.constant 0 : index
    %c0_16 = arith.constant 0 : index
    %20 = vector.load %arg5[%c0_14, %c0_15, %c0_16] : memref<1x128x32xbf16, #tpu.memory_space<vmem>>, vector<1x128x32xbf16>
    %21 = vector.shape_cast %20 : vector<1x128x32xbf16> to vector<128x32xbf16>
    %22 = vector.shape_cast %19 : vector<128x32xbf16> to vector<1x128x32xbf16>
    tpu.vector_store %arg5[%c0_14, %c0_15, %c0_16], %22 {strides = array<i32>} : memref<1x128x32xbf16, #tpu.memory_space<vmem>>, vector<1x128x32xbf16>,
    return
  }
  func.func @transform_0(%arg0: i32) -> (i32, i32, i32) {
    %c0_i32 = arith.constant 0 : i32
    %c0_i32_0 = arith.constant 0 : i32
    %c0_i32_1 = arith.constant 0 : i32
    return %arg0, %c0_i32, %c0_i32_0 : i32, i32, i32
  }
  func.func @transform_1(%arg0: i32) -> (i32, i32, i32) {
    %c0_i32 = arith.constant 0 : i32
    %c0_i32_0 = arith.constant 0 : i32
    %c0_i32_1 = arith.constant 0 : i32
    %c0_i32_2 = arith.constant 0 : i32
    return %c0_i32, %c0_i32_0, %c0_i32_1 : i32, i32, i32
  }
  func.func @transform_2(%arg0: i32) -> (i32, i32) {
    %c0_i32 = arith.constant 0 : i32
    %c0_i32_0 = arith.constant 0 : i32
    %c0_i32_1 = arith.constant 0 : i32
    return %c0_i32, %c0_i32_0 : i32, i32
  }
  func.func @transform_3(%arg0: i32) -> (i32, i32) {
    %c0_i32 = arith.constant 0 : i32
    %c0_i32_0 = arith.constant 0 : i32
    %c0_i32_1 = arith.constant 0 : i32
    return %c0_i32, %c0_i32_0 : i32, i32
  }
  func.func @transform_4(%arg0: i32) -> (i32, i32, i32) {
    %c0_i32 = arith.constant 0 : i32
    %c0_i32_0 = arith.constant 0 : i32
    %c0_i32_1 = arith.constant 0 : i32
    return %arg0, %c0_i32, %c0_i32_0 : i32, i32, i32
  }
}

module attributes {stable_mosaic.version = 11 : i64} {
  func.func @_conv_fused_kernel(%arg0: i32, %arg1: memref<1x80x256xbf16, #tpu.memory_space<vmem>>, %arg2: memref<2x256x64xbf16, #tpu.memory_space<vmem>>, %arg3: memref<1x64xf32, #tpu.memory_space<vmem>>, %arg4: memref<64x1xf32, #tpu.memory_space<vmem>>, %arg5: memref<1x64x64xbf16, #tpu.memory_space<vmem>>) attributes {dimension_semantics = [#tpu.dimension_semantics<parallel>], iteration_bounds = array<i64: 2>, scalar_prefetch = 0 : i64, scratch_operands = 0 : i64, tpu.core_type = #tpu.core_type<tc>, window_params = [{transform_indices = @transform_0, window_bounds = array<i64: 1, 80, 256>}, {pipeline_mode = #tpu.pipeline_mode<synchronous>, transform_indices = @transform_1, window_bounds = array<i64: 2, 256, 64>}, {pipeline_mode = #tpu.pipeline_mode<synchronous>, transform_indices = @transform_2, window_bounds = array<i64: 1, 64>}, {pipeline_mode = #tpu.pipeline_mode<synchronous>, transform_indices = @transform_3, window_bounds = array<i64: 64, 1>}, {transform_indices = @transform_4, window_bounds = array<i64: 1, 64, 64>}]} {
    %c0 = arith.constant 0 : index
    %c0_0 = arith.constant 0 : index
    %c0_1 = arith.constant 0 : index
    %0 = vector.load %arg1[%c0, %c0_0, %c0_1] : memref<1x80x256xbf16, #tpu.memory_space<vmem>>, vector<1x64x256xbf16>
    %1 = vector.shape_cast %0 : vector<1x64x256xbf16> to vector<64x256xbf16>
    %c0_2 = arith.constant 0 : index
    %c0_3 = arith.constant 0 : index
    %c0_4 = arith.constant 0 : index
    %2 = vector.load %arg2[%c0_2, %c0_3, %c0_4] : memref<2x256x64xbf16, #tpu.memory_space<vmem>>, vector<1x256x64xbf16>
    %3 = vector.shape_cast %2 : vector<1x256x64xbf16> to vector<256x64xbf16>
    %cst = arith.constant dense<0.000000e+00> : vector<64x64xf32>
    %4 = tpu.matmul %1, %3, %cst {dimension_numbers = #tpu.dot_dimension_numbers<[1], [0], [0], [1], [0, 0, 1, 1], [], []>} : vector<64x256xbf16>, vector<256x64xbf16>, vector<64x64xf32> -> vector<64x64xf32>
    %c0_5 = arith.constant 0 : index
    %c16 = arith.constant 16 : index
    %c0_6 = arith.constant 0 : index
    %5 = vector.load %arg1[%c0_5, %c16, %c0_6] : memref<1x80x256xbf16, #tpu.memory_space<vmem>>, vector<1x64x256xbf16>
    %6 = vector.shape_cast %5 : vector<1x64x256xbf16> to vector<64x256xbf16>
    %c1 = arith.constant 1 : index
    %c0_7 = arith.constant 0 : index
    %c0_8 = arith.constant 0 : index
    %7 = vector.load %arg2[%c1, %c0_7, %c0_8] : memref<2x256x64xbf16, #tpu.memory_space<vmem>>, vector<1x256x64xbf16>
    %8 = vector.shape_cast %7 : vector<1x256x64xbf16> to vector<256x64xbf16>
    %cst_9 = arith.constant dense<0.000000e+00> : vector<64x64xf32>
    %9 = tpu.matmul %6, %8, %cst_9 {dimension_numbers = #tpu.dot_dimension_numbers<[1], [0], [0], [1], [0, 0, 1, 1], [], []>} : vector<64x256xbf16>, vector<256x64xbf16>, vector<64x64xf32> -> vector<64x64xf32>
    %10 = arith.addf %4, %9 : vector<64x64xf32>
    %c0_10 = arith.constant 0 : index
    %c0_11 = arith.constant 0 : index
    %11 = vector.load %arg3[%c0_10, %c0_11] : memref<1x64xf32, #tpu.memory_space<vmem>>, vector<1x64xf32>
    %12 = vector.broadcast %11 : vector<1x64xf32> to vector<64x64xf32>
    %13 = arith.addf %10, %12 : vector<64x64xf32>
    %c0_12 = arith.constant 0 : index
    %c0_13 = arith.constant 0 : index
    %14 = vector.load %arg4[%c0_12, %c0_13] : memref<64x1xf32, #tpu.memory_space<vmem>>, vector<64x1xf32>
    %15 = vector.broadcast %14 : vector<64x1xf32> to vector<64x64xf32>
    %16 = arith.mulf %13, %15 : vector<64x64xf32>
    %cst_14 = arith.constant dense<0.000000e+00> : vector<64xf32>
    %17 = vector.multi_reduction <add>, %16, %cst_14 [0] : vector<64x64xf32> to vector<64xf32>
    %18 = vector.shape_cast %17 : vector<64xf32> to vector<1x64xf32>
    %cst_15 = arith.constant 6.250000e-02 : f32
    %19 = vector.broadcast %cst_15 : f32 to vector<1x64xf32>
    %20 = arith.mulf %18, %19 : vector<1x64xf32>
    %21 = vector.broadcast %20 : vector<1x64xf32> to vector<64x64xf32>
    %22 = arith.subf %13, %21 : vector<64x64xf32>
    %23 = vector.broadcast %14 : vector<64x1xf32> to vector<64x64xf32>
    %24 = arith.mulf %22, %23 : vector<64x64xf32>
    %25 = arith.mulf %24, %24 : vector<64x64xf32>
    %cst_16 = arith.constant dense<0.000000e+00> : vector<64xf32>
    %26 = vector.multi_reduction <add>, %25, %cst_16 [0] : vector<64x64xf32> to vector<64xf32>
    %27 = vector.shape_cast %26 : vector<64xf32> to vector<1x64xf32>
    %cst_17 = arith.constant 6.250000e-02 : f32
    %28 = vector.broadcast %cst_17 : f32 to vector<1x64xf32>
    %29 = arith.mulf %27, %28 : vector<1x64xf32>
    %30 = vector.broadcast %20 : vector<1x64xf32> to vector<64x64xf32>
    %31 = arith.subf %13, %30 : vector<64x64xf32>
    %cst_18 = arith.constant 9.99999974E-6 : f32
    %32 = vector.broadcast %cst_18 : f32 to vector<1x64xf32>
    %33 = arith.addf %29, %32 : vector<1x64xf32>
    %34 = math.rsqrt %33 : vector<1x64xf32>
    %35 = vector.broadcast %34 : vector<1x64xf32> to vector<64x64xf32>
    %36 = arith.mulf %31, %35 : vector<64x64xf32>
    %cst_19 = arith.constant 0.000000e+00 : f32
    %37 = vector.broadcast %cst_19 : f32 to vector<64x64xf32>
    %38 = arith.cmpf oge, %36, %37 : vector<64x64xf32>
    %cst_20 = arith.constant 2.000000e-01 : f32
    %39 = vector.broadcast %cst_20 : f32 to vector<64x64xf32>
    %40 = arith.mulf %39, %36 : vector<64x64xf32>
    %41 = arith.select %38, %36, %40 : vector<64x64xi1>, vector<64x64xf32>
    %42 = arith.truncf %41 : vector<64x64xf32> to vector<64x64xbf16>
    %c0_21 = arith.constant 0 : index
    %c0_22 = arith.constant 0 : index
    %c0_23 = arith.constant 0 : index
    %43 = vector.load %arg5[%c0_21, %c0_22, %c0_23] : memref<1x64x64xbf16, #tpu.memory_space<vmem>>, vector<1x64x64xbf16>
    %44 = vector.shape_cast %43 : vector<1x64x64xbf16> to vector<64x64xbf16>
    %45 = vector.shape_cast %42 : vector<64x64xbf16> to vector<1x64x64xbf16>
    tpu.vector_store %arg5[%c0_21, %c0_22, %c0_23], %45 {strides = array<i32>} : memref<1x64x64xbf16, #tpu.memory_space<vmem>>, vector<1x64x64xbf16>,
    return
  }
  func.func @transform_0(%arg0: i32) -> (i32, i32, i32) {
    %c0_i32 = arith.constant 0 : i32
    %c0_i32_0 = arith.constant 0 : i32
    %c0_i32_1 = arith.constant 0 : i32
    return %arg0, %c0_i32, %c0_i32_0 : i32, i32, i32
  }
  func.func @transform_1(%arg0: i32) -> (i32, i32, i32) {
    %c0_i32 = arith.constant 0 : i32
    %c0_i32_0 = arith.constant 0 : i32
    %c0_i32_1 = arith.constant 0 : i32
    %c0_i32_2 = arith.constant 0 : i32
    return %c0_i32, %c0_i32_0, %c0_i32_1 : i32, i32, i32
  }
  func.func @transform_2(%arg0: i32) -> (i32, i32) {
    %c0_i32 = arith.constant 0 : i32
    %c0_i32_0 = arith.constant 0 : i32
    %c0_i32_1 = arith.constant 0 : i32
    return %c0_i32, %c0_i32_0 : i32, i32
  }
  func.func @transform_3(%arg0: i32) -> (i32, i32) {
    %c0_i32 = arith.constant 0 : i32
    %c0_i32_0 = arith.constant 0 : i32
    %c0_i32_1 = arith.constant 0 : i32
    return %c0_i32, %c0_i32_0 : i32, i32
  }
  func.func @transform_4(%arg0: i32) -> (i32, i32, i32) {
    %c0_i32 = arith.constant 0 : i32
    %c0_i32_0 = arith.constant 0 : i32
    %c0_i32_1 = arith.constant 0 : i32
    return %arg0, %c0_i32, %c0_i32_0 : i32, i32, i32
  }
}

module attributes {stable_mosaic.version = 11 : i64} {
  func.func @_conv_fused_kernel(%arg0: i32, %arg1: memref<1x48x512xbf16, #tpu.memory_space<vmem>>, %arg2: memref<2x512x128xbf16, #tpu.memory_space<vmem>>, %arg3: memref<1x128xf32, #tpu.memory_space<vmem>>, %arg4: memref<32x1xf32, #tpu.memory_space<vmem>>, %arg5: memref<1x32x128xbf16, #tpu.memory_space<vmem>>) attributes {dimension_semantics = [#tpu.dimension_semantics<parallel>], iteration_bounds = array<i64: 2>, scalar_prefetch = 0 : i64, scratch_operands = 0 : i64, tpu.core_type = #tpu.core_type<tc>, window_params = [{transform_indices = @transform_0, window_bounds = array<i64: 1, 48, 512>}, {pipeline_mode = #tpu.pipeline_mode<synchronous>, transform_indices = @transform_1, window_bounds = array<i64: 2, 512, 128>}, {pipeline_mode = #tpu.pipeline_mode<synchronous>, transform_indices = @transform_2, window_bounds = array<i64: 1, 128>}, {pipeline_mode = #tpu.pipeline_mode<synchronous>, transform_indices = @transform_3, window_bounds = array<i64: 32, 1>}, {transform_indices = @transform_4, window_bounds = array<i64: 1, 32, 128>}]} {
    %c0 = arith.constant 0 : index
    %c0_0 = arith.constant 0 : index
    %c0_1 = arith.constant 0 : index
    %0 = vector.load %arg1[%c0, %c0_0, %c0_1] : memref<1x48x512xbf16, #tpu.memory_space<vmem>>, vector<1x32x512xbf16>
    %1 = vector.shape_cast %0 : vector<1x32x512xbf16> to vector<32x512xbf16>
    %c0_2 = arith.constant 0 : index
    %c0_3 = arith.constant 0 : index
    %c0_4 = arith.constant 0 : index
    %2 = vector.load %arg2[%c0_2, %c0_3, %c0_4] : memref<2x512x128xbf16, #tpu.memory_space<vmem>>, vector<1x512x128xbf16>
    %3 = vector.shape_cast %2 : vector<1x512x128xbf16> to vector<512x128xbf16>
    %cst = arith.constant dense<0.000000e+00> : vector<32x128xf32>
    %4 = tpu.matmul %1, %3, %cst {dimension_numbers = #tpu.dot_dimension_numbers<[1], [0], [0], [1], [0, 0, 1, 1], [], []>} : vector<32x512xbf16>, vector<512x128xbf16>, vector<32x128xf32> -> vector<32x128xf32>
    %c0_5 = arith.constant 0 : index
    %c16 = arith.constant 16 : index
    %c0_6 = arith.constant 0 : index
    %5 = vector.load %arg1[%c0_5, %c16, %c0_6] : memref<1x48x512xbf16, #tpu.memory_space<vmem>>, vector<1x32x512xbf16>
    %6 = vector.shape_cast %5 : vector<1x32x512xbf16> to vector<32x512xbf16>
    %c1 = arith.constant 1 : index
    %c0_7 = arith.constant 0 : index
    %c0_8 = arith.constant 0 : index
    %7 = vector.load %arg2[%c1, %c0_7, %c0_8] : memref<2x512x128xbf16, #tpu.memory_space<vmem>>, vector<1x512x128xbf16>
    %8 = vector.shape_cast %7 : vector<1x512x128xbf16> to vector<512x128xbf16>
    %cst_9 = arith.constant dense<0.000000e+00> : vector<32x128xf32>
    %9 = tpu.matmul %6, %8, %cst_9 {dimension_numbers = #tpu.dot_dimension_numbers<[1], [0], [0], [1], [0, 0, 1, 1], [], []>} : vector<32x512xbf16>, vector<512x128xbf16>, vector<32x128xf32> -> vector<32x128xf32>
    %10 = arith.addf %4, %9 : vector<32x128xf32>
    %c0_10 = arith.constant 0 : index
    %c0_11 = arith.constant 0 : index
    %11 = vector.load %arg3[%c0_10, %c0_11] : memref<1x128xf32, #tpu.memory_space<vmem>>, vector<1x128xf32>
    %12 = vector.broadcast %11 : vector<1x128xf32> to vector<32x128xf32>
    %13 = arith.addf %10, %12 : vector<32x128xf32>
    %c0_12 = arith.constant 0 : index
    %c0_13 = arith.constant 0 : index
    %14 = vector.load %arg4[%c0_12, %c0_13] : memref<32x1xf32, #tpu.memory_space<vmem>>, vector<32x1xf32>
    %15 = vector.broadcast %14 : vector<32x1xf32> to vector<32x128xf32>
    %16 = arith.mulf %13, %15 : vector<32x128xf32>
    %cst_14 = arith.constant dense<0.000000e+00> : vector<128xf32>
    %17 = vector.multi_reduction <add>, %16, %cst_14 [0] : vector<32x128xf32> to vector<128xf32>
    %18 = vector.shape_cast %17 : vector<128xf32> to vector<1x128xf32>
    %cst_15 = arith.constant 2.500000e-01 : f32
    %19 = vector.broadcast %cst_15 : f32 to vector<1x128xf32>
    %20 = arith.mulf %18, %19 : vector<1x128xf32>
    %21 = vector.broadcast %20 : vector<1x128xf32> to vector<32x128xf32>
    %22 = arith.subf %13, %21 : vector<32x128xf32>
    %23 = vector.broadcast %14 : vector<32x1xf32> to vector<32x128xf32>
    %24 = arith.mulf %22, %23 : vector<32x128xf32>
    %25 = arith.mulf %24, %24 : vector<32x128xf32>
    %cst_16 = arith.constant dense<0.000000e+00> : vector<128xf32>
    %26 = vector.multi_reduction <add>, %25, %cst_16 [0] : vector<32x128xf32> to vector<128xf32>
    %27 = vector.shape_cast %26 : vector<128xf32> to vector<1x128xf32>
    %cst_17 = arith.constant 2.500000e-01 : f32
    %28 = vector.broadcast %cst_17 : f32 to vector<1x128xf32>
    %29 = arith.mulf %27, %28 : vector<1x128xf32>
    %30 = vector.broadcast %20 : vector<1x128xf32> to vector<32x128xf32>
    %31 = arith.subf %13, %30 : vector<32x128xf32>
    %cst_18 = arith.constant 9.99999974E-6 : f32
    %32 = vector.broadcast %cst_18 : f32 to vector<1x128xf32>
    %33 = arith.addf %29, %32 : vector<1x128xf32>
    %34 = math.rsqrt %33 : vector<1x128xf32>
    %35 = vector.broadcast %34 : vector<1x128xf32> to vector<32x128xf32>
    %36 = arith.mulf %31, %35 : vector<32x128xf32>
    %cst_19 = arith.constant 0.000000e+00 : f32
    %37 = vector.broadcast %cst_19 : f32 to vector<32x128xf32>
    %38 = arith.cmpf oge, %36, %37 : vector<32x128xf32>
    %cst_20 = arith.constant 2.000000e-01 : f32
    %39 = vector.broadcast %cst_20 : f32 to vector<32x128xf32>
    %40 = arith.mulf %39, %36 : vector<32x128xf32>
    %41 = arith.select %38, %36, %40 : vector<32x128xi1>, vector<32x128xf32>
    %42 = arith.truncf %41 : vector<32x128xf32> to vector<32x128xbf16>
    %c0_21 = arith.constant 0 : index
    %c0_22 = arith.constant 0 : index
    %c0_23 = arith.constant 0 : index
    %43 = vector.load %arg5[%c0_21, %c0_22, %c0_23] : memref<1x32x128xbf16, #tpu.memory_space<vmem>>, vector<1x32x128xbf16>
    %44 = vector.shape_cast %43 : vector<1x32x128xbf16> to vector<32x128xbf16>
    %45 = vector.shape_cast %42 : vector<32x128xbf16> to vector<1x32x128xbf16>
    tpu.vector_store %arg5[%c0_21, %c0_22, %c0_23], %45 {strides = array<i32>} : memref<1x32x128xbf16, #tpu.memory_space<vmem>>, vector<1x32x128xbf16>,
    return
  }
  func.func @transform_0(%arg0: i32) -> (i32, i32, i32) {
    %c0_i32 = arith.constant 0 : i32
    %c0_i32_0 = arith.constant 0 : i32
    %c0_i32_1 = arith.constant 0 : i32
    return %arg0, %c0_i32, %c0_i32_0 : i32, i32, i32
  }
  func.func @transform_1(%arg0: i32) -> (i32, i32, i32) {
    %c0_i32 = arith.constant 0 : i32
    %c0_i32_0 = arith.constant 0 : i32
    %c0_i32_1 = arith.constant 0 : i32
    %c0_i32_2 = arith.constant 0 : i32
    return %c0_i32, %c0_i32_0, %c0_i32_1 : i32, i32, i32
  }
  func.func @transform_2(%arg0: i32) -> (i32, i32) {
    %c0_i32 = arith.constant 0 : i32
    %c0_i32_0 = arith.constant 0 : i32
    %c0_i32_1 = arith.constant 0 : i32
    return %c0_i32, %c0_i32_0 : i32, i32
  }
  func.func @transform_3(%arg0: i32) -> (i32, i32) {
    %c0_i32 = arith.constant 0 : i32
    %c0_i32_0 = arith.constant 0 : i32
    %c0_i32_1 = arith.constant 0 : i32
    return %c0_i32, %c0_i32_0 : i32, i32
  }
  func.func @transform_4(%arg0: i32) -> (i32, i32, i32) {
    %c0_i32 = arith.constant 0 : i32
    %c0_i32_0 = arith.constant 0 : i32
    %c0_i32_1 = arith.constant 0 : i32
    return %arg0, %c0_i32, %c0_i32_0 : i32, i32, i32
  }
}

module attributes {stable_mosaic.version = 11 : i64} {
  func.func @_conv_fused_kernel(%arg0: i32, %arg1: memref<1x64x512xbf16, #tpu.memory_space<vmem>>, %arg2: memref<4x512x128xbf16, #tpu.memory_space<vmem>>, %arg3: memref<1x128xf32, #tpu.memory_space<vmem>>, %arg4: memref<16x1xf32, #tpu.memory_space<vmem>>, %arg5: memref<1x16x128xf32, #tpu.memory_space<vmem>>) attributes {dimension_semantics = [#tpu.dimension_semantics<parallel>], iteration_bounds = array<i64: 2>, scalar_prefetch = 0 : i64, scratch_operands = 0 : i64, tpu.core_type = #tpu.core_type<tc>, window_params = [{transform_indices = @transform_0, window_bounds = array<i64: 1, 64, 512>}, {pipeline_mode = #tpu.pipeline_mode<synchronous>, transform_indices = @transform_1, window_bounds = array<i64: 4, 512, 128>}, {pipeline_mode = #tpu.pipeline_mode<synchronous>, transform_indices = @transform_2, window_bounds = array<i64: 1, 128>}, {pipeline_mode = #tpu.pipeline_mode<synchronous>, transform_indices = @transform_3, window_bounds = array<i64: 16, 1>}, {transform_indices = @transform_4, window_bounds = array<i64: 1, 16, 128>}]} {
    %c0 = arith.constant 0 : index
    %c0_0 = arith.constant 0 : index
    %c0_1 = arith.constant 0 : index
    %0 = vector.load %arg1[%c0, %c0_0, %c0_1] : memref<1x64x512xbf16, #tpu.memory_space<vmem>>, vector<1x16x512xbf16>
    %1 = vector.shape_cast %0 : vector<1x16x512xbf16> to vector<16x512xbf16>
    %c0_2 = arith.constant 0 : index
    %c0_3 = arith.constant 0 : index
    %c0_4 = arith.constant 0 : index
    %2 = vector.load %arg2[%c0_2, %c0_3, %c0_4] : memref<4x512x128xbf16, #tpu.memory_space<vmem>>, vector<1x512x128xbf16>
    %3 = vector.shape_cast %2 : vector<1x512x128xbf16> to vector<512x128xbf16>
    %cst = arith.constant dense<0.000000e+00> : vector<16x128xf32>
    %4 = tpu.matmul %1, %3, %cst {dimension_numbers = #tpu.dot_dimension_numbers<[1], [0], [0], [1], [0, 0, 1, 1], [], []>} : vector<16x512xbf16>, vector<512x128xbf16>, vector<16x128xf32> -> vector<16x128xf32>
    %c0_5 = arith.constant 0 : index
    %c16 = arith.constant 16 : index
    %c0_6 = arith.constant 0 : index
    %5 = vector.load %arg1[%c0_5, %c16, %c0_6] : memref<1x64x512xbf16, #tpu.memory_space<vmem>>, vector<1x16x512xbf16>
    %6 = vector.shape_cast %5 : vector<1x16x512xbf16> to vector<16x512xbf16>
    %c1 = arith.constant 1 : index
    %c0_7 = arith.constant 0 : index
    %c0_8 = arith.constant 0 : index
    %7 = vector.load %arg2[%c1, %c0_7, %c0_8] : memref<4x512x128xbf16, #tpu.memory_space<vmem>>, vector<1x512x128xbf16>
    %8 = vector.shape_cast %7 : vector<1x512x128xbf16> to vector<512x128xbf16>
    %cst_9 = arith.constant dense<0.000000e+00> : vector<16x128xf32>
    %9 = tpu.matmul %6, %8, %cst_9 {dimension_numbers = #tpu.dot_dimension_numbers<[1], [0], [0], [1], [0, 0, 1, 1], [], []>} : vector<16x512xbf16>, vector<512x128xbf16>, vector<16x128xf32> -> vector<16x128xf32>
    %10 = arith.addf %4, %9 : vector<16x128xf32>
    %c0_10 = arith.constant 0 : index
    %c32 = arith.constant 32 : index
    %c0_11 = arith.constant 0 : index
    %11 = vector.load %arg1[%c0_10, %c32, %c0_11] : memref<1x64x512xbf16, #tpu.memory_space<vmem>>, vector<1x16x512xbf16>
    %12 = vector.shape_cast %11 : vector<1x16x512xbf16> to vector<16x512xbf16>
    %c2 = arith.constant 2 : index
    %c0_12 = arith.constant 0 : index
    %c0_13 = arith.constant 0 : index
    %13 = vector.load %arg2[%c2, %c0_12, %c0_13] : memref<4x512x128xbf16, #tpu.memory_space<vmem>>, vector<1x512x128xbf16>
    %14 = vector.shape_cast %13 : vector<1x512x128xbf16> to vector<512x128xbf16>
    %cst_14 = arith.constant dense<0.000000e+00> : vector<16x128xf32>
    %15 = tpu.matmul %12, %14, %cst_14 {dimension_numbers = #tpu.dot_dimension_numbers<[1], [0], [0], [1], [0, 0, 1, 1], [], []>} : vector<16x512xbf16>, vector<512x128xbf16>, vector<16x128xf32> -> vector<16x128xf32>
    %16 = arith.addf %10, %15 : vector<16x128xf32>
    %c0_15 = arith.constant 0 : index
    %c48 = arith.constant 48 : index
    %c0_16 = arith.constant 0 : index
    %17 = vector.load %arg1[%c0_15, %c48, %c0_16] : memref<1x64x512xbf16, #tpu.memory_space<vmem>>, vector<1x16x512xbf16>
    %18 = vector.shape_cast %17 : vector<1x16x512xbf16> to vector<16x512xbf16>
    %c3 = arith.constant 3 : index
    %c0_17 = arith.constant 0 : index
    %c0_18 = arith.constant 0 : index
    %19 = vector.load %arg2[%c3, %c0_17, %c0_18] : memref<4x512x128xbf16, #tpu.memory_space<vmem>>, vector<1x512x128xbf16>
    %20 = vector.shape_cast %19 : vector<1x512x128xbf16> to vector<512x128xbf16>
    %cst_19 = arith.constant dense<0.000000e+00> : vector<16x128xf32>
    %21 = tpu.matmul %18, %20, %cst_19 {dimension_numbers = #tpu.dot_dimension_numbers<[1], [0], [0], [1], [0, 0, 1, 1], [], []>} : vector<16x512xbf16>, vector<512x128xbf16>, vector<16x128xf32> -> vector<16x128xf32>
    %22 = arith.addf %16, %21 : vector<16x128xf32>
    %c0_20 = arith.constant 0 : index
    %c0_21 = arith.constant 0 : index
    %23 = vector.load %arg3[%c0_20, %c0_21] : memref<1x128xf32, #tpu.memory_space<vmem>>, vector<1x128xf32>
    %24 = vector.broadcast %23 : vector<1x128xf32> to vector<16x128xf32>
    %25 = arith.addf %22, %24 : vector<16x128xf32>
    %c0_22 = arith.constant 0 : index
    %c0_23 = arith.constant 0 : index
    %c0_24 = arith.constant 0 : index
    %26 = vector.load %arg5[%c0_22, %c0_23, %c0_24] : memref<1x16x128xf32, #tpu.memory_space<vmem>>, vector<1x16x128xf32>
    %27 = vector.shape_cast %26 : vector<1x16x128xf32> to vector<16x128xf32>
    %28 = vector.shape_cast %25 : vector<16x128xf32> to vector<1x16x128xf32>
    tpu.vector_store %arg5[%c0_22, %c0_23, %c0_24], %28 {strides = array<i32>} : memref<1x16x128xf32, #tpu.memory_space<vmem>>, vector<1x16x128xf32>,
    return
  }
  func.func @transform_0(%arg0: i32) -> (i32, i32, i32) {
    %c0_i32 = arith.constant 0 : i32
    %c0_i32_0 = arith.constant 0 : i32
    %c0_i32_1 = arith.constant 0 : i32
    return %arg0, %c0_i32, %c0_i32_0 : i32, i32, i32
  }
  func.func @transform_1(%arg0: i32) -> (i32, i32, i32) {
    %c0_i32 = arith.constant 0 : i32
    %c0_i32_0 = arith.constant 0 : i32
    %c0_i32_1 = arith.constant 0 : i32
    %c0_i32_2 = arith.constant 0 : i32
    return %c0_i32, %c0_i32_0, %c0_i32_1 : i32, i32, i32
  }
  func.func @transform_2(%arg0: i32) -> (i32, i32) {
    %c0_i32 = arith.constant 0 : i32
    %c0_i32_0 = arith.constant 0 : i32
    %c0_i32_1 = arith.constant 0 : i32
    return %c0_i32, %c0_i32_0 : i32, i32
  }
  func.func @transform_3(%arg0: i32) -> (i32, i32) {
    %c0_i32 = arith.constant 0 : i32
    %c0_i32_0 = arith.constant 0 : i32
    %c0_i32_1 = arith.constant 0 : i32
    return %c0_i32, %c0_i32_0 : i32, i32
  }
  func.func @transform_4(%arg0: i32) -> (i32, i32, i32) {
    %c0_i32 = arith.constant 0 : i32
    %c0_i32_0 = arith.constant 0 : i32
    %c0_i32_1 = arith.constant 0 : i32
    return %arg0, %c0_i32, %c0_i32_0 : i32, i32, i32
  }
}

</mosaic_0001>

<bundles_post_ra>
// kernel: discriminator_forward.4
= control target key start
LH: loop header
LB: loop body
LE: loop exit
PB: predicated region body
PF: predicated region fallthrough
CT: control target
= control target key end

     0   :  { %s932_s15 = smov 0   ;;  %s1036_s0 = inlined_call_operand.vmem [shape: bf16[2,144,32], index: 0, kind: input, shape index: {}]   ;;  %s1037_s1 = inlined_call_operand.vmem [shape: bf16[2,32,32], index: 1, kind: input, shape index: {}]   ;;  %s1038_s2 = inlined_call_operand.vmem [shape: f32[1,32], index: 2, kind: input, shape index: {}]   ;;  %s1039_s3 = inlined_call_operand.vmem [shape: f32[128,1], index: 3, kind: input, shape index: {}]   ;;  %s1040_s4 = inlined_call_operand.vmem [shape: bf16[2,128,32], index: 4, kind: output, shape index: {}]  }
   0x1 LB: > { %s724_s16 = sadd.s32 4294967295, %s905_s15   ;;  %p728_p0 = scmp.ge.s32.totalorder %s905_s15, 1  ;;  %s905_s15 = sphi %s932_s15, %s14_s15  }
   0x2   : > { %p162_p1 = scmp.lt.s32.totalorder %s905_s15, 3 }
   0x4   : > { %p163_p2 = pnand %p728_p0, %p162_p1 }
   0x5   : > { %v886_v0 = vld [vmem:[%s1037_s1 + $0x10] sm:$0xff] (!%p163_p2)   ;;  %p188_p3 = scmp.lt.s32.totalorder (!%p163_p2), %s724_s16, 1  ;;  %v887_v1 = vld [vmem:[%s1037_s1] sm:$0xff] (!%p163_p2)   ;;  %v888_v2 = vld [vmem:[%s1037_s1 + $0x18] sm:$0xff] (!%p163_p2)   ;;  %vm278_vm0 = vcmask (!%p163_p2), 261120   ;;  %vm652_vm3 = vcmask (!%p163_p2), 257024  }
   0x6   : > { %166 = sbr.rel (%p163_p2) target bundleno = 268 (0x10c), region = 36  ;;  %821 = vmatprep.subr.bf16.mxu1 (!%p163_p2), %v886_v0  ;;  %841 = vmatprep.subr.bf16.mxu0 (!%p163_p2), %v887_v1  ;;  %v889_v3 = vld [vmem:[%s1037_s1 + $0x8] sm:$0xff] (!%p163_p2)   ;;  %v977_v15 = vld [vmem:[%s1038_s2] ss:$0 sm:$0xff] (!%p163_p2) }
   0x7   : > { %822 = vmatpush3.bf16.msra.mxu1 (!%p163_p2), %v886_v0  ;;  %842 = vmatpush3.bf16.msra.mxu0 (!%p163_p2), %v887_v1 }
   0x8   : > { %823 = vmatprep.subr.bf16.mxu1 (!%p163_p2), %v888_v2  ;;  %843 = vmatprep.subr.bf16.mxu0 (!%p163_p2), %v889_v3 }
   0xb   : > { %824 = vmatpush3.bf16.msra.mxu1 (!%p163_p2), %v888_v2  ;;  %844 = vmatpush3.bf16.msra.mxu0 (!%p163_p2), %v889_v3 }
   0xd   : > { %s1042_s16 = smov (!%p188_p3, %s724_s16), 1 }
   0xe   : > { %s877_s24 = smul.u32 72, %s1042_s16  ;;  %s784_s30 = sshll.u32 %s1042_s16, 6 }
   0xf   : > { %s987_s7 = scalar_lea.vmem %s1040_s4, %s784_s30 }
  0x10   : > { %s192_s27 = scalar_lea.vmem %s1036_s0, %s877_s24 }
  0x11   : > { %v890_v4 = vld [vmem:[%s192_s27 + $0x8] sm:$0xff]   ;;  %v891_v5 = vld [vmem:[%s192_s27] sm:$0xff]   ;;  %v892_v6 = vld [vmem:[%s192_s27 + $0x10] sm:$0xff]  }
  0x12   : > { %825 = vmatprep.mubr.msk.bf16.mxu1 %vm278_vm0, %v890_v4  ;;  %845 = vmatprep.mubr.msk.bf16.mxu0 %vm278_vm0, %v891_v5  ;;  %v893_v7 = vld [vmem:[%s192_s27 + $0x18] sm:$0xff]   ;;  %v894_v8 = vld [vmem:[%s192_s27 + $0x20] sm:$0xff]   ;;  %v895_v9 = vld [vmem:[%s192_s27 + $0x28] sm:$0xff]  }
  0x13   : > { %826 = vmatmul.mubr.msk.bf16.vlgmr.msra.gmra.mrb[0].mxu1 %vm278_vm0, %v892_v6  ;;  %846 = vmatmul.mubr.msk.bf16.vlgmr.msra.gmra.mrb[0].mxu0 %vm278_vm0, %v890_v4  ;;  %v896_v10 = vld [vmem:[%s192_s27 + $0x30] sm:$0xff]   ;;  %v897_v11 = vld [vmem:[%s192_s27 + $0x38] sm:$0xff]   ;;  %v898_v12 = vld [vmem:[%s192_s27 + $0x40] sm:$0xff]  }
  0x14   : > { %829 = vmatprep.mubr.msk.bf16.mxu1 %vm278_vm0, %v893_v7  ;;  %849 = vmatprep.mubr.msk.bf16.mxu0 %vm278_vm0, %v892_v6 }
  0x1b   : > { %830 = vmatmul.mubr.msk.bf16.gmra.mrb[4].mxu1 %vm278_vm0, %v894_v8  ;;  %850 = vmatmul.mubr.msk.bf16.gmra.mrb[4].mxu0 %vm278_vm0, %v893_v7 }
  0x1c   : > { %833 = vmatprep.mubr.msk.bf16.mxu1 %vm278_vm0, %v895_v9  ;;  %853 = vmatprep.mubr.msk.bf16.mxu0 %vm278_vm0, %v894_v8 }
  0x23   : > { %834 = vmatmul.mubr.msk.bf16.gmra.mrb[8].mxu1 %vm278_vm0, %v896_v10  ;;  %854 = vmatmul.mubr.msk.bf16.gmra.mrb[8].mxu0 %vm278_vm0, %v895_v9 }
  0x24   : > { %837 = vmatprep.mubr.msk.bf16.mxu1 %vm278_vm0, %v897_v11  ;;  %857 = vmatprep.mubr.msk.bf16.mxu0 %vm278_vm0, %v896_v10 }
  0x2b   : > { %838 = vmatmul.mubr.msk.bf16.gmra.mrb[12].mxu1 %vm278_vm0, %v898_v12  ;;  %858 = vmatmul.mubr.msk.bf16.gmra.mrb[12].mxu0 %vm278_vm0, %v897_v11 }
  0xe6   : > { %v827_v13 = vpop.f32.mrb[0].mxu1  ;;  %v847_v14 = vpop.f32.mrb[0].mxu0 }
  0xe7   : > { %v463_v16 = vadd.f32 %v847_v14, %v827_v13  ;;  %v337_v17 = vpop.f32.mrb[1].mxu1  ;;  %v454_v18 = vpop.f32.mrb[1].mxu0 }
  0xe8   : > { %v455_v19 = vadd.f32 %v454_v18, %v337_v17  ;;  %v828_v20 = vpop.f32.mrb[2].mxu1  ;;  %v848_v21 = vpop.f32.mrb[2].mxu0 }
  0xe9   : > { %v526_v22 = vadd.f32 %v977_v15, %v463_v16  ;;  %v466_v23 = vadd.f32 %v848_v21, %v828_v20  ;;  %v340_v24 = vpop.f32.mrb[3].mxu1  ;;  %v457_v25 = vpop.f32.mrb[3].mxu0 }
  0xea   : > { %v524_v26 = vadd.f32 %v977_v15, %v455_v19  ;;  %v458_v27 = vadd.f32 %v457_v25, %v340_v24 }
  0xeb   : > { %vm542_vm1 = vcmp.ge.f32.partialorder %v526_v22, 0.0  ;;  %v558_v28 = vmul.f32 0.2, %v526_v22  ;;  %v527_v29 = vadd.f32 %v977_v15, %v466_v23 }
  0xec   : > { %vm540_vm2 = vcmp.ge.f32.partialorder %v524_v26, 0.0  ;;  %v556_v30 = vmul.f32 0.2, %v524_v26  ;;  %v525_v31 = vadd.f32 %v977_v15, %v458_v27 }
  0xed   : > { %v574_v32 = vsel %vm542_vm1, %v526_v22, %v558_v28  ;;  %vm543_vm4 = vcmp.ge.f32.partialorder %v527_v29, 0.0  ;;  %v559_v33 = vmul.f32 0.2, %v527_v29 }
  0xee   : > { %v787_v34 = vpack.c.bf16 %v574_v32, %v574_v32  ;;  %v572_v35 = vsel %vm540_vm2, %v524_v26, %v556_v30  ;;  %vm541_vm5 = vcmp.ge.f32.partialorder %v525_v31, 0.0  ;;  %v557_v36 = vmul.f32 0.2, %v525_v31  ;;  %v831_v37 = vpop.f32.mrb[4].mxu1  ;;  %v851_v38 = vpop.f32.mrb[4].mxu0 }
  0xef   : > { %v785_v39 = vpack.c.bf16 %v572_v35, %v572_v35  ;;  %v575_v40 = vsel %vm543_vm4, %v527_v29, %v559_v33  ;;  %v479_v41 = vadd.f32 %v851_v38, %v831_v37  ;;  %v353_v42 = vpop.f32.mrb[5].mxu1  ;;  %v470_v43 = vpop.f32.mrb[5].mxu0 }
  0xf0   : > { %655 = vst.msk [vmem:[%s987_s7 + $0x8] sm:$0xf] %vm652_vm3, %v787_v34  ;;  %v788_v44 = vpack.c.bf16 %v575_v40, %v575_v40  ;;  %v573_v45 = vsel %vm541_vm5, %v525_v31, %v557_v36  ;;  %v471_v46 = vadd.f32 %v470_v43, %v353_v42  ;;  %v832_v47 = vpop.f32.mrb[6].mxu1  ;;  %v852_v48 = vpop.f32.mrb[6].mxu0 }
  0xf1   : > { %653 = vst.msk [vmem:[%s987_s7] sm:$0xf] %vm652_vm3, %v785_v39  ;;  %v786_v49 = vpack.c.bf16 %v573_v45, %v573_v45  ;;  %v530_v50 = vadd.f32 %v977_v15, %v479_v41  ;;  %v482_v51 = vadd.f32 %v852_v48, %v832_v47  ;;  %v356_v52 = vpop.f32.mrb[7].mxu1  ;;  %v473_v53 = vpop.f32.mrb[7].mxu0 }
  0xf2   : > { %656 = vst.msk [vmem:[%s987_s7 + $0xc] sm:$0xf] %vm652_vm3, %v788_v44  ;;  %v528_v54 = vadd.f32 %v977_v15, %v471_v46  ;;  %v474_v55 = vadd.f32 %v473_v53, %v356_v52 }
  0xf3   : > { %654 = vst.msk [vmem:[%s987_s7 + $0x4] sm:$0xf] %vm652_vm3, %v786_v49  ;;  %vm546_vm6 = vcmp.ge.f32.partialorder %v530_v50, 0.0  ;;  %v562_v56 = vmul.f32 0.2, %v530_v50  ;;  %v531_v57 = vadd.f32 %v977_v15, %v482_v51 }
  0xf4   : > { %vm544_vm7 = vcmp.ge.f32.partialorder %v528_v54, 0.0  ;;  %v560_v58 = vmul.f32 0.2, %v528_v54  ;;  %v529_v59 = vadd.f32 %v977_v15, %v474_v55 }
  0xf5   : > { %v578_v60 = vsel %vm546_vm6, %v530_v50, %v562_v56  ;;  %vm547_vm8 = vcmp.ge.f32.partialorder %v531_v57, 0.0  ;;  %v563_v61 = vmul.f32 0.2, %v531_v57 }
  0xf6   : > { %v791_v62 = vpack.c.bf16 %v578_v60, %v578_v60  ;;  %v576_v63 = vsel %vm544_vm7, %v528_v54, %v560_v58  ;;  %vm545_vm9 = vcmp.ge.f32.partialorder %v529_v59, 0.0  ;;  %v561_v0 = vmul.f32 0.2, %v529_v59  ;;  %v835_v1 = vpop.f32.mrb[8].mxu1  ;;  %v855_v2 = vpop.f32.mrb[8].mxu0 }
  0xf7   : > { %v789_v3 = vpack.c.bf16 %v576_v63, %v576_v63  ;;  %v579_v4 = vsel %vm547_vm8, %v531_v57, %v563_v61  ;;  %v495_v5 = vadd.f32 %v855_v2, %v835_v1  ;;  %v369_v6 = vpop.f32.mrb[9].mxu1  ;;  %v486_v7 = vpop.f32.mrb[9].mxu0 }
  0xf8   : > { %659 = vst.msk [vmem:[%s987_s7 + $0x18] sm:$0xf] %vm652_vm3, %v791_v62  ;;  %v792_v8 = vpack.c.bf16 %v579_v4, %v579_v4  ;;  %v577_v9 = vsel %vm545_vm9, %v529_v59, %v561_v0  ;;  %v487_v10 = vadd.f32 %v486_v7, %v369_v6  ;;  %v836_v11 = vpop.f32.mrb[10].mxu1  ;;  %v856_v12 = vpop.f32.mrb[10].mxu0 }
  0xf9   : > { %657 = vst.msk [vmem:[%s987_s7 + $0x10] sm:$0xf] %vm652_vm3, %v789_v3  ;;  %v790_v13 = vpack.c.bf16 %v577_v9, %v577_v9  ;;  %v534_v14 = vadd.f32 %v977_v15, %v495_v5  ;;  %v498_v16 = vadd.f32 %v856_v12, %v836_v11  ;;  %v372_v17 = vpop.f32.mrb[11].mxu1  ;;  %v489_v18 = vpop.f32.mrb[11].mxu0 }
  0xfa   : > { %660 = vst.msk [vmem:[%s987_s7 + $0x1c] sm:$0xf] %vm652_vm3, %v792_v8  ;;  %v532_v19 = vadd.f32 %v977_v15, %v487_v10  ;;  %v490_v20 = vadd.f32 %v489_v18, %v372_v17 }
  0xfb   : > { %658 = vst.msk [vmem:[%s987_s7 + $0x14] sm:$0xf] %vm652_vm3, %v790_v13  ;;  %vm550_vm10 = vcmp.ge.f32.partialorder %v534_v14, 0.0  ;;  %v566_v21 = vmul.f32 0.2, %v534_v14  ;;  %v535_v22 = vadd.f32 %v977_v15, %v498_v16 }
  0xfc   : > { %vm548_vm11 = vcmp.ge.f32.partialorder %v532_v19, 0.0  ;;  %v564_v23 = vmul.f32 0.2, %v532_v19  ;;  %v533_v24 = vadd.f32 %v977_v15, %v490_v20 }
  0xfd   : > { %v582_v25 = vsel %vm550_vm10, %v534_v14, %v566_v21  ;;  %vm551_vm12 = vcmp.ge.f32.partialorder %v535_v22, 0.0  ;;  %v567_v26 = vmul.f32 0.2, %v535_v22 }
  0xfe   : > { %v795_v27 = vpack.c.bf16 %v582_v25, %v582_v25  ;;  %v580_v28 = vsel %vm548_vm11, %v532_v19, %v564_v23  ;;  %vm549_vm13 = vcmp.ge.f32.partialorder %v533_v24, 0.0  ;;  %v565_v29 = vmul.f32 0.2, %v533_v24  ;;  %v839_v30 = vpop.f32.mrb[12].mxu1  ;;  %v859_v31 = vpop.f32.mrb[12].mxu0 }
  0xff   : > { %v793_v32 = vpack.c.bf16 %v580_v28, %v580_v28  ;;  %v583_v33 = vsel %vm551_vm12, %v535_v22, %v567_v26  ;;  %v511_v34 = vadd.f32 %v859_v31, %v839_v30  ;;  %v385_v35 = vpop.f32.mrb[13].mxu1  ;;  %v502_v36 = vpop.f32.mrb[13].mxu0 }
 0x100   : > { %663 = vst.msk [vmem:[%s987_s7 + $0x28] sm:$0xf] %vm652_vm3, %v795_v27  ;;  %v796_v37 = vpack.c.bf16 %v583_v33, %v583_v33  ;;  %v581_v38 = vsel %vm549_vm13, %v533_v24, %v565_v29  ;;  %v503_v39 = vadd.f32 %v502_v36, %v385_v35  ;;  %v840_v40 = vpop.f32.mrb[14].mxu1  ;;  %v860_v41 = vpop.f32.mrb[14].mxu0 }
 0x101   : > { %661 = vst.msk [vmem:[%s987_s7 + $0x20] sm:$0xf] %vm652_vm3, %v793_v32  ;;  %v794_v42 = vpack.c.bf16 %v581_v38, %v581_v38  ;;  %v538_v43 = vadd.f32 %v977_v15, %v511_v34  ;;  %v514_v44 = vadd.f32 %v860_v41, %v840_v40  ;;  %v388_v45 = vpop.f32.mrb[15].mxu1  ;;  %v505_v46 = vpop.f32.mrb[15].mxu0 }
 0x102   : > { %664 = vst.msk [vmem:[%s987_s7 + $0x2c] sm:$0xf] %vm652_vm3, %v796_v37  ;;  %v536_v47 = vadd.f32 %v977_v15, %v503_v39  ;;  %v506_v48 = vadd.f32 %v505_v46, %v388_v45 }
 0x103   : > { %662 = vst.msk [vmem:[%s987_s7 + $0x24] sm:$0xf] %vm652_vm3, %v794_v42  ;;  %vm554_vm14 = vcmp.ge.f32.partialorder %v538_v43, 0.0  ;;  %v570_v49 = vmul.f32 0.2, %v538_v43  ;;  %v539_v50 = vadd.f32 %v977_v15, %v514_v44 }
 0x104   : > { %vm552_vm15 = vcmp.ge.f32.partialorder %v536_v47, 0.0  ;;  %v568_v51 = vmul.f32 0.2, %v536_v47  ;;  %v537_v52 = vadd.f32 %v977_v15, %v506_v48 }
 0x105   : > { %v586_v53 = vsel %vm554_vm14, %v538_v43, %v570_v49  ;;  %vm555_vm0 = vcmp.ge.f32.partialorder %v539_v50, 0.0  ;;  %v571_v54 = vmul.f32 0.2, %v539_v50 }
 0x106   : > { %v799_v55 = vpack.c.bf16 %v586_v53, %v586_v53  ;;  %v584_v56 = vsel %vm552_vm15, %v536_v47, %v568_v51  ;;  %vm553_vm1 = vcmp.ge.f32.partialorder %v537_v52, 0.0  ;;  %v569_v57 = vmul.f32 0.2, %v537_v52 }
 0x107   : > { %v797_v58 = vpack.c.bf16 %v584_v56, %v584_v56  ;;  %v587_v59 = vsel %vm555_vm0, %v539_v50, %v571_v54 }
 0x108   : > { %667 = vst.msk [vmem:[%s987_s7 + $0x38] sm:$0xf] %vm652_vm3, %v799_v55  ;;  %v800_v60 = vpack.c.bf16 %v587_v59, %v587_v59  ;;  %v585_v61 = vsel %vm553_vm1, %v537_v52, %v569_v57 }
 0x109   : > { %665 = vst.msk [vmem:[%s987_s7 + $0x30] sm:$0xf] %vm652_vm3, %v797_v58  ;;  %v798_v62 = vpack.c.bf16 %v585_v61, %v585_v61 }
 0x10a   : > { %668 = vst.msk [vmem:[%s987_s7 + $0x3c] sm:$0xf] %vm652_vm3, %v800_v60 }
 0x10b   : > { %666 = vst.msk [vmem:[%s987_s7 + $0x34] sm:$0xf] %vm652_vm3, %v798_v62 }
 0x10c PF: > { %s14_s15 = sadd.s32 1, %s905_s15  }
 0x10d   : > { %p11_p4 = scmp.ge.s32.totalorder %s14_s15, 4  }
 0x10f   :  { %13 = sbr.rel (!%p11_p4) target bundleno = 1 (0x1), region = 67 }

// kernel: discriminator_forward.5
= control target key start
LH: loop header
LB: loop body
LE: loop exit
PB: predicated region body
PF: predicated region fallthrough
CT: control target
= control target key end

     0   :  { %s1235_s15 = smov 0   ;;  %s1469_s0 = inlined_call_operand.vmem [shape: bf16[2,80,256], index: 0, kind: input, shape index: {}]   ;;  %s1470_s1 = inlined_call_operand.vmem [shape: bf16[2,256,64], index: 1, kind: input, shape index: {}]   ;;  %s1471_s2 = inlined_call_operand.vmem [shape: f32[1,64], index: 2, kind: input, shape index: {}]   ;;  %s1472_s3 = inlined_call_operand.vmem [shape: f32[64,1], index: 3, kind: input, shape index: {}]   ;;  %s1473_s4 = inlined_call_operand.vmem [shape: bf16[2,64,64], index: 4, kind: output, shape index: {}]  }
   0x1 LB: > { %s952_s16 = sadd.s32 4294967295, %s1207_s15   ;;  %p956_p0 = scmp.ge.s32.totalorder %s1207_s15, 1  ;;  %s1207_s15 = sphi %s1235_s15, %s14_s15  }
   0x2   : > { %p162_p1 = scmp.lt.s32.totalorder %s1207_s15, 3 }
   0x4   : > { %p163_p2 = pnand %p956_p0, %p162_p1 }
   0x5   : > { %v1152_v0 = vld [vmem:[%s1470_s1 + $0xc0] sm:$0xff] (!%p163_p2)   ;;  %v1209_v3 = vmov (!%p163_p2), 0   ;;  %v1156_v5 = vld [vmem:[%s1470_s1 + $0xc8] sm:$0xff] (!%p163_p2)   ;;  %v1160_v9 = vld [vmem:[%s1470_s1 + $0xd0] sm:$0xff] (!%p163_p2)   ;;  %p188_p3 = scmp.lt.s32.totalorder (!%p163_p2), %s952_s16, 1  ;;  %vm753_vm0 = vcmask (!%p163_p2), 523264  }
   0x6   : > { %166 = sbr.rel (%p163_p2) target bundleno = 366 (0x16e), region = 36  ;;  %v1153_v1 = vld [vmem:[%s1470_s1 + $0x40] sm:$0xff] (!%p163_p2)   ;;  %1060 = vmatprep.subr.bf16.mxu0 (!%p163_p2), %v1152_v0  ;;  %1150 = vset.pattern.permute.xlu0 (!%p163_p2), %v1209_v3  ;;  %v1157_v6 = vld [vmem:[%s1470_s1 + $0x48] sm:$0xff] (!%p163_p2)   ;;  %v1161_v10 = vld [vmem:[%s1470_s1 + $0x50] sm:$0xff] (!%p163_p2)   ;;  %vm888_vm1 = vcmask (!%p163_p2), 519168  }
   0x7   : > { %v1154_v2 = vld [vmem:[%s1470_s1 + $0x80] sm:$0xff] (!%p163_p2)   ;;  %1100 = vmatprep.subr.bf16.mxu1 (!%p163_p2), %v1153_v1  ;;  %1151 = vset.pattern.permute.xlu1 (!%p163_p2), %v1209_v3  ;;  %v1158_v7 = vld [vmem:[%s1470_s1 + $0x88] sm:$0xff] (!%p163_p2)   ;;  %v1162_v11 = vld [vmem:[%s1470_s1 + $0x90] sm:$0xff] (!%p163_p2)  }
   0x8   : > { %v1155_v4 = vld [vmem:[%s1470_s1] sm:$0xff] (!%p163_p2)   ;;  %1061 = vmatpush3.bf16.msra.mxu0 (!%p163_p2), %v1154_v2  ;;  %v1159_v8 = vld [vmem:[%s1470_s1 + $0x8] sm:$0xff] (!%p163_p2)   ;;  %v1163_v12 = vld [vmem:[%s1470_s1 + $0x10] sm:$0xff] (!%p163_p2)  }
   0x9   : > { %1101 = vmatpush3.bf16.msra.mxu1 (!%p163_p2), %v1155_v4  ;;  %1062 = vmatprep.subr.bf16.mxu0 (!%p163_p2), %v1156_v5  ;;  %v1164_v13 = vld [vmem:[%s1470_s1 + $0xd8] sm:$0xff] (!%p163_p2)   ;;  %v1168_v17 = vld [vmem:[%s1470_s1 + $0xe0] sm:$0xff] (!%p163_p2)   ;;  %v1172_v21 = vld [vmem:[%s1470_s1 + $0xe8] sm:$0xff] (!%p163_p2)  }
   0xa   : > { %1102 = vmatprep.subr.bf16.mxu1 (!%p163_p2), %v1157_v6  ;;  %v1165_v14 = vld [vmem:[%s1470_s1 + $0x58] sm:$0xff] (!%p163_p2)   ;;  %v1169_v18 = vld [vmem:[%s1470_s1 + $0x60] sm:$0xff] (!%p163_p2)   ;;  %v1173_v22 = vld [vmem:[%s1470_s1 + $0x68] sm:$0xff] (!%p163_p2)  }
   0xb   : > { %v1166_v15 = vld [vmem:[%s1470_s1 + $0x98] sm:$0xff] (!%p163_p2)   ;;  %v1170_v19 = vld [vmem:[%s1470_s1 + $0xa0] sm:$0xff] (!%p163_p2)   ;;  %v1174_v23 = vld [vmem:[%s1470_s1 + $0xa8] sm:$0xff] (!%p163_p2)  }
   0xc   : > { %1063 = vmatpush3.bf16.msra.mxu0 (!%p163_p2), %v1158_v7  ;;  %v1167_v16 = vld [vmem:[%s1470_s1 + $0x18] sm:$0xff] (!%p163_p2)   ;;  %v1171_v20 = vld [vmem:[%s1470_s1 + $0x20] sm:$0xff] (!%p163_p2)   ;;  %v1175_v24 = vld [vmem:[%s1470_s1 + $0x28] sm:$0xff] (!%p163_p2)  }
   0xd   : > { %1103 = vmatpush3.bf16.msra.mxu1 %v1159_v8  ;;  %1064 = vmatprep.subr.bf16.mxu0 %v1160_v9  ;;  %s1475_s16 = smov (!%p188_p3, %s952_s16), 1  ;;  %v1176_v25 = vld [vmem:[%s1470_s1 + $0xf0] sm:$0xff]   ;;  %v1180_v29 = vld [vmem:[%s1470_s1 + $0xf8] sm:$0xff]   ;;  %v697_v38 = vld [vmem:[%s1472_s3] sm:$0xff] }
   0xe   : > { %1104 = vmatprep.subr.bf16.mxu1 %v1161_v10  ;;  %v1177_v26 = vld [vmem:[%s1470_s1 + $0x70] sm:$0xff]   ;;  %s1140_s21 = smul.u32 80, %s1475_s16  ;;  %v1181_v30 = vld [vmem:[%s1470_s1 + $0x78] sm:$0xff]   ;;  %707 = vperm.xlu0 %1150, %v697_v38   ;;  %v698_v41 = vld [vmem:[%s1472_s3 + $0x8] sm:$0xff]  ;;  %s1051_s5 = sshll.u32 %s1475_s16, 5 }
   0xf   : > { %v1178_v27 = vld [vmem:[%s1470_s1 + $0xb0] sm:$0xff]   ;;  %v1182_v31 = vld [vmem:[%s1470_s1 + $0xb8] sm:$0xff]   ;;  %v701_v44 = vld [vmem:[%s1472_s3 + $0x20] sm:$0xff]  ;;  %s197_s16 = scalar_lea.vmem %s1473_s4, %s1051_s5 }
  0x10   : > { %1065 = vmatpush3.bf16.msra.mxu0 %v1162_v11  ;;  %v1179_v28 = vld [vmem:[%s1470_s1 + $0x30] sm:$0xff]   ;;  %s1343_s6 = scalar_lea.vmem %s1469_s0, %s1140_s21  ;;  %v1183_v32 = vld [vmem:[%s1470_s1 + $0x38] sm:$0xff]   ;;  %v702_v45 = vld [vmem:[%s1472_s3 + $0x28] sm:$0xff] }
  0x11   : > { %1105 = vmatpush3.bf16.msra.mxu1 %v1163_v12  ;;  %1066 = vmatprep.subr.bf16.mxu0 %v1164_v13  ;;  %v1184_v33 = vld [vmem:[%s1343_s6 + $0x10] ss:$8 sps:$4 sm:$0xff]   ;;  %v1186_v34 = vld [vmem:[%s1343_s6 + $0x14] ss:$8 sps:$4 sm:$0xff]   ;;  %v1187_v35 = vld [vmem:[%s1343_s6] ss:$8 sps:$4 sm:$0xff]  }
  0x12   : > { %1106 = vmatprep.subr.bf16.mxu1 %v1165_v14  ;;  %v1189_v36 = vld [vmem:[%s1343_s6 + $0x4] ss:$8 sps:$4 sm:$0xff]   ;;  %448 = vmatprep.mubr.bf16.mxu0 %v1186_v34  ;;  %v699_v39 = vld [vmem:[%s1472_s3 + $0x10] sm:$0xff]  ;;  %v1192_v40 = vld [vmem:[%s1343_s6 + $0x20] ss:$8 sps:$4 sm:$0xff]  }
  0x13   : > { %v1190_v37 = vld [vmem:[%s1343_s6 + $0x24] ss:$8 sps:$4 sm:$0xff]   ;;  %649 = vmatprep.mubr.bf16.mxu1 %v1189_v36  ;;  %717 = vperm.xlu1 %1151, %v699_v39   ;;  %v1193_v42 = vld [vmem:[%s1343_s6 + $0x34] ss:$8 sps:$4 sm:$0xff]   ;;  %v1195_v46 = vld [vmem:[%s1343_s6 + $0x30] ss:$8 sps:$4 sm:$0xff]  }
  0x14   : > { %1067 = vmatpush3.bf16.msra.mxu0 %v1166_v15  ;;  %v700_v43 = vld [vmem:[%s1472_s3 + $0x18] sm:$0xff]  ;;  %712 = vperm.xlu0 %1150, %v698_v41   ;;  %v703_v47 = vld [vmem:[%s1472_s3 + $0x30] sm:$0xff]  ;;  %v1196_v48 = vld [vmem:[%s1343_s6 + $0x44] ss:$8 sps:$4 sm:$0xff]  }
  0x15   : > { %1107 = vmatpush3.bf16.msra.mxu1 %v1167_v16  ;;  %1068 = vmatprep.subr.bf16.mxu0 %v1168_v17  ;;  %v704_v49 = vld [vmem:[%s1472_s3 + $0x38] sm:$0xff]  ;;  %v1198_v50 = vld [vmem:[%s1343_s6 + $0x40] ss:$8 sps:$4 sm:$0xff]  }
  0x16   : > { %1108 = vmatprep.subr.bf16.mxu1 %v1169_v18  ;;  %v1390_v63 = vld [vmem:[%s1471_s2] ss:$0 sm:$0xff] }
  0x17   : > { %722 = vperm.xlu1 %1151, %v700_v43  }
  0x18   : > { %1069 = vmatpush3.bf16.msra.mxu0 %v1170_v19  ;;  %727 = vperm.xlu0 %1150, %v701_v44  }
  0x19   : > { %1109 = vmatpush3.bf16.msra.mxu1 %v1171_v20  ;;  %1070 = vmatprep.subr.bf16.mxu0 %v1172_v21 }
  0x1a   : > { %1110 = vmatprep.subr.bf16.mxu1 %v1173_v22 }
  0x1b   : > { %732 = vperm.xlu1 %1151, %v702_v45  }
  0x1c   : > { %1071 = vmatpush3.bf16.msra.mxu0 %v1174_v23  ;;  %737 = vperm.xlu0 %1150, %v703_v47  }
  0x1d   : > { %1111 = vmatpush3.bf16.msra.mxu1 %v1175_v24  ;;  %1072 = vmatprep.subr.bf16.mxu0 %v1176_v25 }
  0x1e   : > { %1112 = vmatprep.subr.bf16.mxu1 %v1177_v26 }
  0x1f   : > { %742 = vperm.xlu1 %1151, %v704_v49  }
  0x20   : > { %1073 = vmatpush3.bf16.msra.mxu0 %v1178_v27 }
  0x21   : > { %1113 = vmatpush3.bf16.msra.mxu1 %v1179_v28  ;;  %1074 = vmatprep.subr.bf16.mxu0 %v1180_v29 }
  0x22   : > { %1114 = vmatprep.subr.bf16.mxu1 %v1181_v30 }
  0x24   : > { %1075 = vmatpush3.bf16.msra.mxu0 %v1182_v31 }
  0x25   : > { %1115 = vmatpush3.bf16.msra.mxu1 %v1183_v32 }
  0x27   : > { %449 = vmatmul.mubr.bf16.vlgmr.msra.gmra.mrb[0].mxu0 %v1184_v33 }
  0x28   : > { %650 = vmatmul.mubr.bf16.vlgmr.msra.gmra.mrb[0].mxu1 %v1187_v35  ;;  %456 = vmatprep.mubr.bf16.mxu0 %v1190_v37 }
  0x29   : > { %657 = vmatprep.mubr.bf16.mxu1 %v1186_v34 }
  0x2f   : > { %457 = vmatmul.mubr.bf16.gmra.mrb[4].mxu0 %v1192_v40 }
  0x30   : > { %658 = vmatmul.mubr.bf16.gmra.mrb[4].mxu1 %v1184_v33  ;;  %464 = vmatprep.mubr.bf16.mxu0 %v1193_v42 }
  0x31   : > { %665 = vmatprep.mubr.bf16.mxu1 %v1190_v37 }
  0x37   : > { %465 = vmatmul.mubr.bf16.gmra.mrb[8].mxu0 %v1195_v46 }
  0x38   : > { %666 = vmatmul.mubr.bf16.gmra.mrb[8].mxu1 %v1192_v40  ;;  %472 = vmatprep.mubr.bf16.mxu0 %v1196_v48 }
  0x39   : > { %673 = vmatprep.mubr.bf16.mxu1 %v1193_v42 }
  0x3f   : > { %473 = vmatmul.mubr.bf16.gmra.mrb[12].mxu0 %v1198_v50 }
  0x40   : > { %674 = vmatmul.mubr.bf16.gmra.mrb[12].mxu1 %v1195_v46 }
  0x8d   : > { %v1385_v52 = vpop.permute.xlu0 %707 }
  0x92   : > { %v1395_v4 = vpop.permute.xlu1 %717 }
  0x93   : > { %v1397_v6 = vpop.permute.xlu0 %712 }
  0x96   : > { %v1411_v27 = vpop.permute.xlu1 %722 }
  0x97   : > { %v728_v48 = vpop.permute.xlu0 %727 }
  0xfa   : > { %v1076_v51 = vpop.f32.mrb[0].mxu0 }
  0xfb   : > { %v1116_v53 = vpop.f32.mrb[0].mxu1  ;;  %v1077_v54 = vpop.f32.mrb[1].mxu0 }
  0xfc   : > { %v1078_v55 = vadd.f32 %v1077_v54, %v1076_v51  ;;  %v1117_v56 = vpop.f32.mrb[1].mxu1  ;;  %v1079_v57 = vpop.f32.mrb[2].mxu0 }
  0xfd   : > { %v1118_v58 = vadd.f32 %v1117_v56, %v1116_v53  ;;  %v1119_v59 = vpop.f32.mrb[2].mxu1  ;;  %v1080_v60 = vpop.f32.mrb[3].mxu0 }
  0xfe   : > { %v1081_v61 = vadd.f32 %v1080_v60, %v1079_v57  ;;  %v1120_v62 = vpop.f32.mrb[3].mxu1  ;;  %v733_v51 = vpop.permute.xlu1 %732 }
  0xff   : > { %v652_v0 = vadd.f32 %v1118_v58, %v1078_v55  ;;  %v1121_v1 = vadd.f32 %v1120_v62, %v1119_v59 }
 0x101   : > { %v655_v2 = vadd.f32 %v1121_v1, %v1081_v61  ;;  %v1393_v3 = vadd.f32 %v1390_v63, %v652_v0 }
 0x102   : > { %v1082_v5 = vpop.f32.mrb[4].mxu0 }
 0x103   : > { %v745_v7 = vmul.f32 %v1385_v52, %v1393_v3  ;;  %v1122_v8 = vpop.f32.mrb[4].mxu1  ;;  %v1402_v9 = vadd.f32 %v1390_v63, %v655_v2  ;;  %v1083_v10 = vpop.f32.mrb[5].mxu0 }
 0x104   : > { %v1084_v11 = vadd.f32 %v1083_v10, %v1082_v5  ;;  %v1123_v12 = vpop.f32.mrb[5].mxu1  ;;  %v1085_v13 = vpop.f32.mrb[6].mxu0 }
 0x105   : > { %v746_v14 = vmul.f32 %v1397_v6, %v1402_v9  ;;  %v1124_v15 = vadd.f32 %v1123_v12, %v1122_v8  ;;  %v1125_v16 = vpop.f32.mrb[6].mxu1  ;;  %v1086_v17 = vpop.f32.mrb[7].mxu0  ;;  %v754_v20 = vsel %vm753_vm0, %v745_v7, 0.0 }
 0x106   : > { %v1087_v18 = vadd.f32 %v1086_v17, %v1085_v13  ;;  %v1126_v19 = vpop.f32.mrb[7].mxu1 }
 0x107   : > { %v755_v21 = vsel %vm753_vm0, %v746_v14, 0.0  ;;  %v660_v22 = vadd.f32 %v1124_v15, %v1084_v11  ;;  %v1127_v23 = vadd.f32 %v1126_v19, %v1125_v16  ;;  %v738_v16 = vpop.permute.xlu0 %737  ;;  %v743_v19 = vpop.permute.xlu1 %742 }
 0x108   : > { %v756_v24 = vadd.f32 %v755_v21, %v754_v20 }
 0x109   : > { %v1409_v25 = vadd.f32 %v1390_v63, %v660_v22  ;;  %v663_v26 = vadd.f32 %v1127_v23, %v1087_v18 }
 0x10a   : > { %v1088_v28 = vpop.f32.mrb[8].mxu0 }
 0x10b   : > { %v747_v29 = vmul.f32 %v1395_v4, %v1409_v25  ;;  %v1416_v30 = vadd.f32 %v1390_v63, %v663_v26  ;;  %v1128_v31 = vpop.f32.mrb[8].mxu1  ;;  %v1089_v32 = vpop.f32.mrb[9].mxu0 }
 0x10c   : > { %v1090_v33 = vadd.f32 %v1089_v32, %v1088_v28  ;;  %v1129_v34 = vpop.f32.mrb[9].mxu1  ;;  %v1091_v35 = vpop.f32.mrb[10].mxu0 }
 0x10d   : > { %v748_v36 = vmul.f32 %v1411_v27, %v1416_v30  ;;  %v757_v37 = vsel %vm753_vm0, %v747_v29, 0.0  ;;  %v1130_v38 = vadd.f32 %v1129_v34, %v1128_v31  ;;  %v1131_v39 = vpop.f32.mrb[10].mxu1  ;;  %v1092_v40 = vpop.f32.mrb[11].mxu0 }
 0x10e   : > { %v758_v41 = vadd.f32 %v757_v37, %v756_v24  ;;  %v1093_v42 = vadd.f32 %v1092_v40, %v1091_v35  ;;  %v1132_v43 = vpop.f32.mrb[11].mxu1 }
 0x10f   : > { %v759_v44 = vsel %vm753_vm0, %v748_v36, 0.0  ;;  %v668_v45 = vadd.f32 %v1130_v38, %v1090_v33  ;;  %v1133_v46 = vadd.f32 %v1132_v43, %v1131_v39 }
 0x110   : > { %v760_v47 = vadd.f32 %v759_v44, %v758_v41 }
 0x111   : > { %v693_v49 = vadd.f32 %v1390_v63, %v668_v45  ;;  %v671_v50 = vadd.f32 %v1133_v46, %v1093_v42 }
 0x112   : > { %v1094_v53 = vpop.f32.mrb[12].mxu0 }
 0x113   : > { %v749_v54 = vmul.f32 %v728_v48, %v693_v49  ;;  %v694_v55 = vadd.f32 %v1390_v63, %v671_v50  ;;  %v1134_v56 = vpop.f32.mrb[12].mxu1  ;;  %v1095_v57 = vpop.f32.mrb[13].mxu0 }
 0x114   : > { %v1096_v58 = vadd.f32 %v1095_v57, %v1094_v53  ;;  %v1135_v59 = vpop.f32.mrb[13].mxu1  ;;  %v1097_v60 = vpop.f32.mrb[14].mxu0 }
 0x115   : > { %v761_v61 = vsel %vm753_vm0, %v749_v54, 0.0  ;;  %v750_v62 = vmul.f32 %v733_v51, %v694_v55  ;;  %v1136_v0 = vadd.f32 %v1135_v59, %v1134_v56  ;;  %v1137_v1 = vpop.f32.mrb[14].mxu1  ;;  %v1098_v2 = vpop.f32.mrb[15].mxu0 }
 0x116   : > { %v762_v5 = vadd.f32 %v761_v61, %v760_v47  ;;  %v1099_v7 = vadd.f32 %v1098_v2, %v1097_v60  ;;  %v1138_v8 = vpop.f32.mrb[15].mxu1 }
 0x117   : > { %v763_v10 = vsel %vm753_vm0, %v750_v62, 0.0  ;;  %v676_v11 = vadd.f32 %v1136_v0, %v1096_v58  ;;  %v1139_v12 = vadd.f32 %v1138_v8, %v1137_v1 }
 0x118   : > { %v764_v13 = vadd.f32 %v763_v10, %v762_v5 }
 0x119   : > { %v695_v14 = vadd.f32 %v1390_v63, %v676_v11  ;;  %v679_v15 = vadd.f32 %v1139_v12, %v1099_v7 }
 0x11b   : > { %v751_v17 = vmul.f32 %v738_v16, %v695_v14  ;;  %v696_v18 = vadd.f32 %v1390_v63, %v679_v15 }
 0x11d   : > { %v765_v20 = vsel %vm753_vm0, %v751_v17, 0.0  ;;  %v752_v21 = vmul.f32 %v743_v19, %v696_v18 }
 0x11e   : > { %v766_v22 = vadd.f32 %v765_v20, %v764_v13 }
 0x11f   : > { %v767_v23 = vsel %vm753_vm0, %v752_v21, 0.0 }
 0x120   : > { %v768_v24 = vadd.f32 %v767_v23, %v766_v22 }
 0x122   : > { %v769_v26 = vrot.slane %v768_v24, 4 }
 0x124   : > { %v770_v28 = vadd.f32 %v769_v26, %v768_v24 }
 0x126   : > { %v771_v29 = vrot.slane %v770_v28, 2 }
 0x128   : > { %v772_v31 = vadd.f32 %v771_v29, %v770_v28 }
 0x12a   : > { %v773_v32 = vrot.slane %v772_v31, 1 }
 0x12c   : > { %v774_v33 = vadd.f32 %v773_v32, %v772_v31 }
 0x12e   : > { %v775_v34 = vmul.f32 0.0625, %v774_v33 }
 0x130   : > { %v776_v35 = vsub.f32 %v1393_v3, %v775_v34  ;;  %v777_v36 = vsub.f32 %v1402_v9, %v775_v34  ;;  %v778_v63 = vsub.f32 %v1409_v25, %v775_v34  ;;  %v779_v37 = vsub.f32 %v1416_v30, %v775_v34 }
 0x131   : > { %v780_v38 = vsub.f32 %v693_v49, %v775_v34  ;;  %v781_v39 = vsub.f32 %v694_v55, %v775_v34  ;;  %v782_v40 = vsub.f32 %v695_v14, %v775_v34  ;;  %v783_v41 = vsub.f32 %v696_v18, %v775_v34 }
 0x132   : > { %v784_v42 = vmul.f32 %v776_v35, %v1385_v52  ;;  %v785_v43 = vmul.f32 %v777_v36, %v1397_v6  ;;  %v786_v44 = vmul.f32 %v778_v63, %v1395_v4  ;;  %v787_v45 = vmul.f32 %v779_v37, %v1411_v27 }
 0x133   : > { %v788_v46 = vmul.f32 %v780_v38, %v728_v48  ;;  %v789_v50 = vmul.f32 %v781_v39, %v733_v51  ;;  %v790_v54 = vmul.f32 %v782_v40, %v738_v16  ;;  %v791_v56 = vmul.f32 %v783_v41, %v743_v19 }
 0x134   : > { %v792_v3 = vmul.f32 %v784_v42, %v784_v42  ;;  %v793_v47 = vmul.f32 %v785_v43, %v785_v43  ;;  %v794_v9 = vmul.f32 %v786_v44, %v786_v44  ;;  %v795_v25 = vmul.f32 %v787_v45, %v787_v45 }
 0x135   : > { %v796_v55 = vmul.f32 %v788_v46, %v788_v46  ;;  %v797_v4 = vmul.f32 %v789_v50, %v789_v50  ;;  %v798_v57 = vmul.f32 %v790_v54, %v790_v54  ;;  %v799_v59 = vmul.f32 %v791_v56, %v791_v56 }
 0x136   : > { %v800_v30 = vsel %vm753_vm0, %v792_v3, 0.0  ;;  %v801_v49 = vsel %vm753_vm0, %v793_v47, 0.0  ;;  %v803_v52 = vsel %vm753_vm0, %v794_v9, 0.0  ;;  %v805_v27 = vsel %vm753_vm0, %v795_v25, 0.0 }
 0x137   : > { %v802_v53 = vadd.f32 %v801_v49, %v800_v30  ;;  %v807_v58 = vsel %vm753_vm0, %v796_v55, 0.0  ;;  %v809_v60 = vsel %vm753_vm0, %v797_v4, 0.0  ;;  %v811_v62 = vsel %vm753_vm0, %v798_v57, 0.0 }
 0x138   : > { %v813_v1 = vsel %vm753_vm0, %v799_v59, 0.0 }
 0x139   : > { %v804_v6 = vadd.f32 %v803_v52, %v802_v53 }
 0x13b   : > { %v806_v48 = vadd.f32 %v805_v27, %v804_v6 }
 0x13d   : > { %v808_v51 = vadd.f32 %v807_v58, %v806_v48 }
 0x13f   : > { %v810_v61 = vadd.f32 %v809_v60, %v808_v51 }
 0x141   : > { %v812_v0 = vadd.f32 %v811_v62, %v810_v61 }
 0x143   : > { %v814_v2 = vadd.f32 %v813_v1, %v812_v0 }
 0x145   : > { %v815_v5 = vrot.slane %v814_v2, 4 }
 0x147   : > { %v816_v7 = vadd.f32 %v815_v5, %v814_v2 }
 0x149   : > { %v817_v8 = vrot.slane %v816_v7, 2 }
 0x14b   : > { %v818_v10 = vadd.f32 %v817_v8, %v816_v7 }
 0x14d   : > { %v819_v11 = vrot.slane %v818_v10, 1 }
 0x14f   : > { %v820_v12 = vadd.f32 %v819_v11, %v818_v10 }
 0x151   : > { %v821_v13 = vmul.f32 0.0625, %v820_v12 }
 0x153   : > { %v822_v14 = vadd.f32 1e-05, %v821_v13 }
 0x155   : > { %1199 = vrsqrt.f32 %v822_v14 }
 0x15f   : > { %v1200_v15 = vpop.eup %1199 }
 0x160   : > { %v824_v16 = vmul.f32 %v1200_v15, %v776_v35  ;;  %v825_v17 = vmul.f32 %v1200_v15, %v777_v36  ;;  %v826_v18 = vmul.f32 %v1200_v15, %v778_v63  ;;  %v827_v19 = vmul.f32 %v1200_v15, %v779_v37 }
 0x161   : > { %v828_v20 = vmul.f32 %v1200_v15, %v780_v38  ;;  %v829_v21 = vmul.f32 %v1200_v15, %v781_v39  ;;  %v830_v22 = vmul.f32 %v1200_v15, %v782_v40  ;;  %v831_v23 = vmul.f32 %v1200_v15, %v783_v41 }
 0x162   : > { %vm832_vm2 = vcmp.ge.f32.partialorder %v824_v16, 0.0  ;;  %vm833_vm3 = vcmp.ge.f32.partialorder %v825_v17, 0.0  ;;  %vm834_vm4 = vcmp.ge.f32.partialorder %v826_v18, 0.0  ;;  %vm835_vm5 = vcmp.ge.f32.partialorder %v827_v19, 0.0 }
 0x163   : > { %vm836_vm6 = vcmp.ge.f32.partialorder %v828_v20, 0.0  ;;  %vm837_vm7 = vcmp.ge.f32.partialorder %v829_v21, 0.0  ;;  %vm838_vm8 = vcmp.ge.f32.partialorder %v830_v22, 0.0  ;;  %vm839_vm9 = vcmp.ge.f32.partialorder %v831_v23, 0.0 }
 0x164   : > { %v840_v24 = vmul.f32 0.2, %v824_v16  ;;  %v841_v26 = vmul.f32 0.2, %v825_v17  ;;  %v842_v28 = vmul.f32 0.2, %v826_v18 }
 0x165   : > { %v843_v29 = vmul.f32 0.2, %v827_v19  ;;  %v844_v31 = vmul.f32 0.2, %v828_v20  ;;  %v845_v32 = vmul.f32 0.2, %v829_v21 }
 0x166   : > { %v846_v33 = vmul.f32 0.2, %v830_v22  ;;  %v847_v34 = vmul.f32 0.2, %v831_v23  ;;  %v848_v35 = vsel %vm832_vm2, %v824_v16, %v840_v24  ;;  %v849_v36 = vsel %vm833_vm3, %v825_v17, %v841_v26 }
 0x167   : > { %v850_v63 = vsel %vm834_vm4, %v826_v18, %v842_v28  ;;  %v851_v37 = vsel %vm835_vm5, %v827_v19, %v843_v29  ;;  %v852_v38 = vsel %vm836_vm6, %v828_v20, %v844_v31  ;;  %v853_v39 = vsel %vm837_vm7, %v829_v21, %v845_v32 }
 0x168   : > { %v854_v40 = vsel %vm838_vm8, %v830_v22, %v846_v33  ;;  %v855_v41 = vsel %vm839_vm9, %v831_v23, %v847_v34  ;;  %v1052_v42 = vpack.c.bf16 %v848_v35, %v848_v35  ;;  %v1053_v43 = vpack.c.bf16 %v849_v36, %v849_v36 }
 0x169   : > { %v1054_v44 = vpack.c.bf16 %v850_v63, %v850_v63  ;;  %v1055_v45 = vpack.c.bf16 %v851_v37, %v851_v37  ;;  %v1056_v46 = vpack.c.bf16 %v852_v38, %v852_v38  ;;  %v1057_v3 = vpack.c.bf16 %v853_v39, %v853_v39 }
 0x16a   : > { %v1058_v47 = vpack.c.bf16 %v854_v40, %v854_v40  ;;  %v1059_v9 = vpack.c.bf16 %v855_v41, %v855_v41  ;;  %889 = vst.msk [vmem:[%s197_s16] sm:$0xf] %vm888_vm1, %v1052_v42  ;;  %890 = vst.msk [vmem:[%s197_s16 + $0x4] sm:$0xf] %vm888_vm1, %v1053_v43 }
 0x16b   : > { %891 = vst.msk [vmem:[%s197_s16 + $0x8] sm:$0xf] %vm888_vm1, %v1054_v44  ;;  %892 = vst.msk [vmem:[%s197_s16 + $0xc] sm:$0xf] %vm888_vm1, %v1055_v45 }
 0x16c   : > { %893 = vst.msk [vmem:[%s197_s16 + $0x10] sm:$0xf] %vm888_vm1, %v1056_v46  ;;  %894 = vst.msk [vmem:[%s197_s16 + $0x14] sm:$0xf] %vm888_vm1, %v1057_v3 }
 0x16d   : > { %895 = vst.msk [vmem:[%s197_s16 + $0x18] sm:$0xf] %vm888_vm1, %v1058_v47  ;;  %896 = vst.msk [vmem:[%s197_s16 + $0x1c] sm:$0xf] %vm888_vm1, %v1059_v9 }
 0x16e PF: > { %s14_s15 = sadd.s32 1, %s1207_s15  }
 0x16f   : > { %p11_p4 = scmp.ge.s32.totalorder %s14_s15, 4  }
 0x171   :  { %13 = sbr.rel (!%p11_p4) target bundleno = 1 (0x1), region = 67 }

// kernel: discriminator_forward.6
= control target key start
LH: loop header
LB: loop body
LE: loop exit
PB: predicated region body
PF: predicated region fallthrough
CT: control target
= control target key end

     0   :  { %s1585_s15 = smov 0   ;;  %s1847_s0 = inlined_call_operand.vmem [shape: bf16[2,48,512], index: 0, kind: input, shape index: {}]   ;;  %s1848_s1 = inlined_call_operand.vmem [shape: bf16[2,512,128], index: 1, kind: input, shape index: {}]   ;;  %s1849_s2 = inlined_call_operand.vmem [shape: f32[1,128], index: 2, kind: input, shape index: {}]   ;;  %s1850_s3 = inlined_call_operand.vmem [shape: f32[32,1], index: 3, kind: input, shape index: {}]   ;;  %s1851_s4 = inlined_call_operand.vmem [shape: bf16[2,32,128], index: 4, kind: output, shape index: {}]  }
   0x1 LB: > { %s1168_s16 = sadd.s32 4294967295, %s1557_s15   ;;  %p1172_p0 = scmp.ge.s32.totalorder %s1557_s15, 1  ;;  %s1557_s15 = sphi %s1585_s15, %s14_s15  }
   0x2   : > { %p162_p1 = scmp.lt.s32.totalorder %s1557_s15, 3 }
   0x4   : > { %p163_p2 = pnand %p1172_p0, %p162_p1 }
   0x5   : > { %v1467_v0 = vld [vmem:[%s1848_s1 + $0x140] sm:$0xff] (!%p163_p2)   ;;  %v1559_v3 = vmov (!%p163_p2), 0   ;;  %v1471_v5 = vld [vmem:[%s1848_s1 + $0x148] sm:$0xff] (!%p163_p2)   ;;  %v1475_v9 = vld [vmem:[%s1848_s1 + $0x150] sm:$0xff] (!%p163_p2)   ;;  %p188_p3 = scmp.lt.s32.totalorder (!%p163_p2), %s1168_s16, 1 }
   0x6   : > { %166 = sbr.rel (%p163_p2) target bundleno = 369 (0x171), region = 36  ;;  %v1468_v1 = vld [vmem:[%s1848_s1 + $0x1c0] sm:$0xff] (!%p163_p2)   ;;  %1343 = vmatprep.subr.bf16.mxu0 (!%p163_p2), %v1467_v0  ;;  %1465 = vset.pattern.permute.xlu0 (!%p163_p2), %v1559_v3  ;;  %v1472_v6 = vld [vmem:[%s1848_s1 + $0x1c8] sm:$0xff] (!%p163_p2)   ;;  %v1476_v10 = vld [vmem:[%s1848_s1 + $0x1d0] sm:$0xff] (!%p163_p2)  }
   0x7   : > { %v1469_v2 = vld [vmem:[%s1848_s1 + $0x100] sm:$0xff] (!%p163_p2)   ;;  %1371 = vmatprep.subr.bf16.mxu1 (!%p163_p2), %v1468_v1  ;;  %1466 = vset.pattern.permute.xlu1 (!%p163_p2), %v1559_v3  ;;  %v1473_v7 = vld [vmem:[%s1848_s1 + $0x108] sm:$0xff] (!%p163_p2)   ;;  %v1477_v11 = vld [vmem:[%s1848_s1 + $0x110] sm:$0xff] (!%p163_p2)  }
   0x8   : > { %v1470_v4 = vld [vmem:[%s1848_s1 + $0x180] sm:$0xff] (!%p163_p2)   ;;  %1344 = vmatpush3.bf16.msra.mxu0 (!%p163_p2), %v1469_v2  ;;  %v1474_v8 = vld [vmem:[%s1848_s1 + $0x188] sm:$0xff] (!%p163_p2)   ;;  %v1478_v12 = vld [vmem:[%s1848_s1 + $0x190] sm:$0xff] (!%p163_p2)  }
   0x9   : > { %1372 = vmatpush3.bf16.msra.mxu1 (!%p163_p2), %v1470_v4  ;;  %1345 = vmatprep.subr.bf16.mxu0 (!%p163_p2), %v1471_v5  ;;  %v1479_v13 = vld [vmem:[%s1848_s1 + $0x158] sm:$0xff] (!%p163_p2)   ;;  %v1483_v17 = vld [vmem:[%s1848_s1 + $0x160] sm:$0xff] (!%p163_p2)   ;;  %v1487_v21 = vld [vmem:[%s1848_s1 + $0x168] sm:$0xff] (!%p163_p2)  }
   0xa   : > { %1373 = vmatprep.subr.bf16.mxu1 (!%p163_p2), %v1472_v6  ;;  %v1480_v14 = vld [vmem:[%s1848_s1 + $0x1d8] sm:$0xff] (!%p163_p2)   ;;  %v1484_v18 = vld [vmem:[%s1848_s1 + $0x1e0] sm:$0xff] (!%p163_p2)   ;;  %v1488_v22 = vld [vmem:[%s1848_s1 + $0x1e8] sm:$0xff] (!%p163_p2)  }
   0xb   : > { %v1481_v15 = vld [vmem:[%s1848_s1 + $0x118] sm:$0xff] (!%p163_p2)   ;;  %v1485_v19 = vld [vmem:[%s1848_s1 + $0x120] sm:$0xff] (!%p163_p2)   ;;  %v1489_v23 = vld [vmem:[%s1848_s1 + $0x128] sm:$0xff] (!%p163_p2)  }
   0xc   : > { %1346 = vmatpush3.bf16.msra.mxu0 (!%p163_p2), %v1473_v7  ;;  %v1482_v16 = vld [vmem:[%s1848_s1 + $0x198] sm:$0xff] (!%p163_p2)   ;;  %v1486_v20 = vld [vmem:[%s1848_s1 + $0x1a0] sm:$0xff] (!%p163_p2)   ;;  %v1490_v24 = vld [vmem:[%s1848_s1 + $0x1a8] sm:$0xff] (!%p163_p2)  }
   0xd   : > { %1374 = vmatpush3.bf16.msra.mxu1 %v1474_v8  ;;  %1347 = vmatprep.subr.bf16.mxu0 %v1475_v9  ;;  %s1853_s16 = smov (!%p188_p3, %s1168_s16), 1  ;;  %v1491_v25 = vld [vmem:[%s1848_s1 + $0x170] sm:$0xff]   ;;  %v1495_v29 = vld [vmem:[%s1848_s1 + $0x178] sm:$0xff]   ;;  %v1505_v37 = vld [vmem:[%s1848_s1 + $0x40] sm:$0xff]  }
   0xe   : > { %1375 = vmatprep.subr.bf16.mxu1 %v1476_v10  ;;  %v1492_v26 = vld [vmem:[%s1848_s1 + $0x1f0] sm:$0xff]   ;;  %s1455_s21 = smul.u32 96, %s1853_s16  ;;  %v1496_v30 = vld [vmem:[%s1848_s1 + $0x1f8] sm:$0xff]   ;;  %v1506_v38 = vld [vmem:[%s1848_s1 + $0xc0] sm:$0xff]   ;;  %s1327_s17 = sshll.u32 %s1853_s16, 4 }
   0xf   : > { %v1493_v27 = vld [vmem:[%s1848_s1 + $0x130] sm:$0xff]   ;;  %v1497_v31 = vld [vmem:[%s1848_s1 + $0x138] sm:$0xff]   ;;  %v1507_v39 = vld [vmem:[%s1848_s1] sm:$0xff]   ;;  %s197_s20 = scalar_lea.vmem %s1851_s4, %s1327_s17 }
  0x10   : > { %1348 = vmatpush3.bf16.msra.mxu0 %v1477_v11  ;;  %v1494_v28 = vld [vmem:[%s1848_s1 + $0x1b0] sm:$0xff]   ;;  %s1693_s6 = scalar_lea.vmem %s1847_s0, %s1455_s21  ;;  %v1498_v32 = vld [vmem:[%s1848_s1 + $0x1b8] sm:$0xff]   ;;  %v1508_v40 = vld [vmem:[%s1848_s1 + $0x80] sm:$0xff]  }
  0x11   : > { %1376 = vmatpush3.bf16.msra.mxu1 %v1478_v12  ;;  %1349 = vmatprep.subr.bf16.mxu0 %v1479_v13  ;;  %v1702_v33 = vld [vmem:[%s1693_s6 + $0x20] ss:$16 sps:$4 sm:$0xff]   ;;  %v1705_v34 = vld [vmem:[%s1693_s6 + $0x24] ss:$16 sps:$4 sm:$0xff]   ;;  %v1708_v35 = vld [vmem:[%s1693_s6 + $0x28] ss:$16 sps:$4 sm:$0xff]  }
  0x12   : > { %1377 = vmatprep.subr.bf16.mxu1 %v1480_v14  ;;  %v1711_v36 = vld [vmem:[%s1693_s6 + $0x2c] ss:$16 sps:$4 sm:$0xff]   ;;  %608 = vmatprep.mubr.bf16.mxu0 %v1705_v34  ;;  %v1513_v45 = vld [vmem:[%s1848_s1 + $0x50] sm:$0xff]   ;;  %v1521_v53 = vld [vmem:[%s1848_s1 + $0x60] sm:$0xff]  }
  0x13   : > { %657 = vmatprep.mubr.bf16.mxu1 %v1711_v36  ;;  %v1509_v41 = vld [vmem:[%s1848_s1 + $0x48] sm:$0xff]   ;;  %v1514_v46 = vld [vmem:[%s1848_s1 + $0xd0] sm:$0xff]   ;;  %v1517_v49 = vld [vmem:[%s1848_s1 + $0x58] sm:$0xff]  }
  0x14   : > { %1350 = vmatpush3.bf16.msra.mxu0 %v1481_v15  ;;  %v1510_v42 = vld [vmem:[%s1848_s1 + $0xc8] sm:$0xff]   ;;  %v1515_v47 = vld [vmem:[%s1848_s1 + $0x10] sm:$0xff]   ;;  %v1518_v50 = vld [vmem:[%s1848_s1 + $0xd8] sm:$0xff]  }
  0x15   : > { %1378 = vmatpush3.bf16.msra.mxu1 %v1482_v16  ;;  %1351 = vmatprep.subr.bf16.mxu0 %v1483_v17  ;;  %v1511_v43 = vld [vmem:[%s1848_s1 + $0x8] sm:$0xff]   ;;  %v1516_v48 = vld [vmem:[%s1848_s1 + $0x90] sm:$0xff]   ;;  %v1519_v51 = vld [vmem:[%s1848_s1 + $0x18] sm:$0xff]  }
  0x16   : > { %1379 = vmatprep.subr.bf16.mxu1 %v1484_v18  ;;  %v1512_v44 = vld [vmem:[%s1848_s1 + $0x88] sm:$0xff]   ;;  %v1520_v52 = vld [vmem:[%s1848_s1 + $0x98] sm:$0xff]   ;;  %v1522_v54 = vld [vmem:[%s1848_s1 + $0xe0] sm:$0xff]  }
  0x17   : > { %v1523_v55 = vld [vmem:[%s1848_s1 + $0x20] sm:$0xff]   ;;  %v1527_v58 = vld [vmem:[%s1693_s6 + $0x4c] ss:$16 sps:$4 sm:$0xff]   ;;  %v1532_v62 = vld [vmem:[%s1693_s6 + $0x48] ss:$16 sps:$4 sm:$0xff]  }
  0x18   : > { %1352 = vmatpush3.bf16.msra.mxu0 %v1485_v19  ;;  %v1524_v56 = vld [vmem:[%s1848_s1 + $0xa0] sm:$0xff]   ;;  %v1529_v59 = vld [vmem:[%s1848_s1 + $0x68] sm:$0xff]   ;;  %v1535_v1 = vld [vmem:[%s1848_s1 + $0x70] sm:$0xff]  }
  0x19   : > { %1380 = vmatpush3.bf16.msra.mxu1 %v1486_v20  ;;  %1353 = vmatprep.subr.bf16.mxu0 %v1487_v21  ;;  %v1525_v57 = vld [vmem:[%s1693_s6 + $0x44] ss:$16 sps:$4 sm:$0xff]   ;;  %v1530_v60 = vld [vmem:[%s1848_s1 + $0xe8] sm:$0xff]   ;;  %v1531_v61 = vld [vmem:[%s1693_s6 + $0x40] ss:$16 sps:$4 sm:$0xff]  }
  0x1a   : > { %1381 = vmatprep.subr.bf16.mxu1 %v1488_v22  ;;  %v1533_v63 = vld [vmem:[%s1848_s1 + $0x28] sm:$0xff]   ;;  %v1536_v2 = vld [vmem:[%s1848_s1 + $0xf0] sm:$0xff]   ;;  %v1539_v5 = vld [vmem:[%s1848_s1 + $0x78] sm:$0xff]  }
  0x1b   : > { %v1534_v0 = vld [vmem:[%s1848_s1 + $0xa8] sm:$0xff]   ;;  %v1537_v3 = vld [vmem:[%s1848_s1 + $0x30] sm:$0xff]   ;;  %v1540_v6 = vld [vmem:[%s1848_s1 + $0xf8] sm:$0xff]  }
  0x1c   : > { %1354 = vmatpush3.bf16.msra.mxu0 %v1489_v23  ;;  %v1538_v4 = vld [vmem:[%s1848_s1 + $0xb0] sm:$0xff]   ;;  %v1541_v7 = vld [vmem:[%s1848_s1 + $0x38] sm:$0xff]   ;;  %v1015_v13 = vld [vmem:[%s1850_s3] sm:$0xff] }
  0x1d   : > { %1382 = vmatpush3.bf16.msra.mxu1 %v1490_v24  ;;  %1355 = vmatprep.subr.bf16.mxu0 %v1491_v25  ;;  %v1542_v8 = vld [vmem:[%s1848_s1 + $0xb8] sm:$0xff]   ;;  %v1543_v9 = vld [vmem:[%s1693_s6] ss:$16 sps:$4 sm:$0xff]   ;;  %v1545_v10 = vld [vmem:[%s1693_s6 + $0x4] ss:$16 sps:$4 sm:$0xff]  }
  0x1e   : > { %1383 = vmatprep.subr.bf16.mxu1 %v1492_v26  ;;  %v1546_v11 = vld [vmem:[%s1693_s6 + $0x8] ss:$16 sps:$4 sm:$0xff]   ;;  %v1548_v12 = vld [vmem:[%s1693_s6 + $0xc] ss:$16 sps:$4 sm:$0xff]   ;;  %v1017_v14 = vld [vmem:[%s1850_s3 + $0x10] sm:$0xff]  ;;  %1021 = vperm.xlu0 %1465, %v1015_v13  }
  0x1f   : > { %1031 = vperm.xlu1 %1466, %v1017_v14   ;;  %v1016_v15 = vld [vmem:[%s1850_s3 + $0x8] sm:$0xff]  ;;  %v1018_v16 = vld [vmem:[%s1850_s3 + $0x18] sm:$0xff] }
  0x20   : > { %1356 = vmatpush3.bf16.msra.mxu0 %v1493_v27 }
  0x21   : > { %1384 = vmatpush3.bf16.msra.mxu1 %v1494_v28  ;;  %1357 = vmatprep.subr.bf16.mxu0 %v1495_v29 }
  0x22   : > { %1385 = vmatprep.subr.bf16.mxu1 %v1496_v30  ;;  %1026 = vperm.xlu0 %1465, %v1016_v15  }
  0x23   : > { %1036 = vperm.xlu1 %1466, %v1018_v16  }
  0x24   : > { %1358 = vmatpush3.bf16.msra.mxu0 %v1497_v31 }
  0x25   : > { %1386 = vmatpush3.bf16.msra.mxu1 %v1498_v32  ;;  %1399 = vmatprep.subr.bf16.mxu0 %v1505_v37 }
  0x26   : > { %1427 = vmatprep.subr.bf16.mxu1 %v1506_v38 }
  0x27   : > { %609 = vmatmul.mubr.bf16.vlgmr.msra.gmra.mrb[0].mxu0 %v1702_v33 }
  0x28   : > { %658 = vmatmul.mubr.bf16.vlgmr.msra.gmra.mrb[0].mxu1 %v1708_v35  ;;  %1400 = vmatpush3.bf16.msra.mxu0 %v1507_v39 }
  0x29   : > { %1428 = vmatpush3.bf16.msra.mxu1 %v1508_v40  ;;  %1401 = vmatprep.subr.bf16.mxu0 %v1509_v41 }
  0x2a   : > { %1429 = vmatprep.subr.bf16.mxu1 %v1510_v42  ;;  %616 = vmatprep.mubr.bf16.mxu0 %v1525_v57 }
  0x2b   : > { %665 = vmatprep.mubr.bf16.mxu1 %v1527_v58 }
  0x2c   : > { %1402 = vmatpush3.bf16.msra.mxu0 %v1511_v43 }
  0x2d   : > { %1430 = vmatpush3.bf16.msra.mxu1 %v1512_v44  ;;  %1403 = vmatprep.subr.bf16.mxu0 %v1513_v45 }
  0x2e   : > { %1431 = vmatprep.subr.bf16.mxu1 %v1514_v46 }
  0x2f   : > { %617 = vmatmul.mubr.bf16.gmra.mrb[4].mxu0 %v1531_v61 }
  0x30   : > { %1404 = vmatpush3.bf16.msra.mxu0 %v1515_v47  ;;  %666 = vmatmul.mubr.bf16.gmra.mrb[4].mxu1 %v1532_v62 }
  0x31   : > { %1432 = vmatpush3.bf16.msra.mxu1 %v1516_v48  ;;  %1405 = vmatprep.subr.bf16.mxu0 %v1517_v49 }
  0x32   : > { %1433 = vmatprep.subr.bf16.mxu1 %v1518_v50  ;;  %938 = vmatprep.mubr.bf16.mxu0 %v1545_v10 }
  0x33   : > { %987 = vmatprep.mubr.bf16.mxu1 %v1548_v12 }
  0x34   : > { %1406 = vmatpush3.bf16.msra.mxu0 %v1519_v51 }
  0x35   : > { %1434 = vmatpush3.bf16.msra.mxu1 %v1520_v52  ;;  %1407 = vmatprep.subr.bf16.mxu0 %v1521_v53 }
  0x36   : > { %1435 = vmatprep.subr.bf16.mxu1 %v1522_v54 }
  0x38   : > { %1408 = vmatpush3.bf16.msra.mxu0 %v1523_v55 }
  0x39   : > { %1436 = vmatpush3.bf16.msra.mxu1 %v1524_v56  ;;  %1409 = vmatprep.subr.bf16.mxu0 %v1529_v59  ;;  %v1320_v59 = vld [vmem:[%s1849_s2] ss:$0 sm:$0xff] }
  0x3a   : > { %1437 = vmatprep.subr.bf16.mxu1 %v1530_v60 }
  0x3c   : > { %1410 = vmatpush3.bf16.msra.mxu0 %v1533_v63 }
  0x3d   : > { %1438 = vmatpush3.bf16.msra.mxu1 %v1534_v0  ;;  %1411 = vmatprep.subr.bf16.mxu0 %v1535_v1 }
  0x3e   : > { %1439 = vmatprep.subr.bf16.mxu1 %v1536_v2 }
  0x40   : > { %1412 = vmatpush3.bf16.msra.mxu0 %v1537_v3 }
  0x41   : > { %1440 = vmatpush3.bf16.msra.mxu1 %v1538_v4  ;;  %1413 = vmatprep.subr.bf16.mxu0 %v1539_v5 }
  0x42   : > { %1441 = vmatprep.subr.bf16.mxu1 %v1540_v6 }
  0x44   : > { %1414 = vmatpush3.bf16.msra.mxu0 %v1541_v7 }
  0x45   : > { %1442 = vmatpush3.bf16.msra.mxu1 %v1542_v8 }
  0x47   : > { %939 = vmatmul.mubr.bf16.vlgmr.msra.gmra.mrb[8].mxu0 %v1543_v9 }
  0x48   : > { %988 = vmatmul.mubr.bf16.vlgmr.msra.gmra.mrb[8].mxu1 %v1546_v11  ;;  %946 = vmatprep.mubr.bf16.mxu0 %v1705_v34 }
  0x49   : > { %995 = vmatprep.mubr.bf16.mxu1 %v1711_v36 }
  0x4f   : > { %947 = vmatmul.mubr.bf16.gmra.mrb[12].mxu0 %v1702_v33 }
  0x50   : > { %996 = vmatmul.mubr.bf16.gmra.mrb[12].mxu1 %v1708_v35 }
  0x9d   : > { %v1022_v46 = vpop.permute.xlu0 %1021 }
  0x9e   : > { %v1032_v16 = vpop.permute.xlu1 %1031 }
  0xa1   : > { %v1027_v1 = vpop.permute.xlu0 %1026 }
  0xfa   : > { %v1359_v17 = vpop.f32.mrb[0].mxu0 }
  0xfb   : > { %v1387_v18 = vpop.f32.mrb[0].mxu1  ;;  %v1360_v19 = vpop.f32.mrb[1].mxu0 }
  0xfc   : > { %v1361_v20 = vadd.f32 %v1360_v19, %v1359_v17  ;;  %v1388_v21 = vpop.f32.mrb[1].mxu1  ;;  %v1362_v22 = vpop.f32.mrb[2].mxu0 }
  0xfd   : > { %v1389_v23 = vadd.f32 %v1388_v21, %v1387_v18  ;;  %v1390_v24 = vpop.f32.mrb[2].mxu1  ;;  %v1363_v25 = vpop.f32.mrb[3].mxu0 }
  0xfe   : > { %v1364_v26 = vadd.f32 %v1363_v25, %v1362_v22  ;;  %v1391_v27 = vpop.f32.mrb[3].mxu1  ;;  %v1037_v25 = vpop.permute.xlu1 %1036 }
  0xff   : > { %v660_v28 = vadd.f32 %v1389_v23, %v1361_v20  ;;  %v1392_v29 = vadd.f32 %v1391_v27, %v1390_v24 }
 0x101   : > { %v663_v30 = vadd.f32 %v1392_v29, %v1364_v26 }
 0x102   : > { %v1365_v31 = vpop.f32.mrb[4].mxu0 }
 0x103   : > { %v1393_v32 = vpop.f32.mrb[4].mxu1  ;;  %v1366_v34 = vpop.f32.mrb[5].mxu0 }
 0x104   : > { %v1367_v33 = vadd.f32 %v1366_v34, %v1365_v31  ;;  %v1394_v36 = vpop.f32.mrb[5].mxu1  ;;  %v1368_v35 = vpop.f32.mrb[6].mxu0 }
 0x105   : > { %v1395_v37 = vadd.f32 %v1394_v36, %v1393_v32  ;;  %v1396_v38 = vpop.f32.mrb[6].mxu1  ;;  %v1369_v39 = vpop.f32.mrb[7].mxu0 }
 0x106   : > { %v1370_v40 = vadd.f32 %v1369_v39, %v1368_v35  ;;  %v1397_v41 = vpop.f32.mrb[7].mxu1 }
 0x107   : > { %v668_v42 = vadd.f32 %v1395_v37, %v1367_v33  ;;  %v1398_v43 = vadd.f32 %v1397_v41, %v1396_v38 }
 0x109   : > { %v671_v44 = vadd.f32 %v1398_v43, %v1370_v40 }
 0x11a   : > { %v1415_v45 = vpop.f32.mrb[8].mxu0 }
 0x11b   : > { %v1443_v47 = vpop.f32.mrb[8].mxu1  ;;  %v1416_v48 = vpop.f32.mrb[9].mxu0 }
 0x11c   : > { %v1417_v49 = vadd.f32 %v1416_v48, %v1415_v45  ;;  %v1444_v50 = vpop.f32.mrb[9].mxu1  ;;  %v1418_v51 = vpop.f32.mrb[10].mxu0 }
 0x11d   : > { %v1445_v52 = vadd.f32 %v1444_v50, %v1443_v47  ;;  %v1446_v53 = vpop.f32.mrb[10].mxu1  ;;  %v1419_v54 = vpop.f32.mrb[11].mxu0 }
 0x11e   : > { %v941_v55 = vadd.f32 %v1417_v49, %v660_v28  ;;  %v1420_v56 = vadd.f32 %v1419_v54, %v1418_v51  ;;  %v1447_v57 = vpop.f32.mrb[11].mxu1 }
 0x11f   : > { %v1448_v58 = vadd.f32 %v1447_v57, %v1446_v53 }
 0x120   : > { %v990_v60 = vadd.f32 %v1445_v52, %v941_v55  ;;  %v944_v61 = vadd.f32 %v1420_v56, %v663_v30 }
 0x122   : > { %v993_v62 = vadd.f32 %v1448_v58, %v944_v61  ;;  %v1011_v63 = vadd.f32 %v1320_v59, %v990_v60  ;;  %v1421_v0 = vpop.f32.mrb[12].mxu0 }
 0x123   : > { %v1449_v2 = vpop.f32.mrb[12].mxu1  ;;  %v1422_v3 = vpop.f32.mrb[13].mxu0 }
 0x124   : > { %v1423_v4 = vadd.f32 %v1422_v3, %v1421_v0  ;;  %v1450_v5 = vpop.f32.mrb[13].mxu1  ;;  %v1424_v6 = vpop.f32.mrb[14].mxu0  ;;  %v1012_v7 = vadd.f32 %v1320_v59, %v993_v62  ;;  %v1039_v11 = vmul.f32 %v1022_v46, %v1011_v63 }
 0x125   : > { %v1451_v8 = vadd.f32 %v1450_v5, %v1449_v2  ;;  %v1452_v9 = vpop.f32.mrb[14].mxu1  ;;  %v1425_v10 = vpop.f32.mrb[15].mxu0 }
 0x126   : > { %v949_v12 = vadd.f32 %v1423_v4, %v668_v42  ;;  %v1040_v13 = vmul.f32 %v1027_v1, %v1012_v7  ;;  %v1426_v14 = vadd.f32 %v1425_v10, %v1424_v6  ;;  %v1453_v15 = vpop.f32.mrb[15].mxu1 }
 0x127   : > { %v1454_v17 = vadd.f32 %v1453_v15, %v1452_v9 }
 0x128   : > { %v998_v18 = vadd.f32 %v1451_v8, %v949_v12  ;;  %v1043_v19 = vadd.f32 %v1040_v13, %v1039_v11  ;;  %v952_v20 = vadd.f32 %v1426_v14, %v671_v44 }
 0x12a   : > { %v1013_v21 = vadd.f32 %v1320_v59, %v998_v18  ;;  %v1001_v22 = vadd.f32 %v1454_v17, %v952_v20 }
 0x12c   : > { %v1041_v23 = vmul.f32 %v1032_v16, %v1013_v21  ;;  %v1014_v24 = vadd.f32 %v1320_v59, %v1001_v22 }
 0x12e   : > { %v1042_v26 = vmul.f32 %v1037_v25, %v1014_v24  ;;  %v1044_v27 = vadd.f32 %v1043_v19, %v1041_v23 }
 0x130   : > { %v1045_v28 = vadd.f32 %v1044_v27, %v1042_v26 }
 0x132   : > { %v1046_v29 = vrot.slane %v1045_v28, 4 }
 0x134   : > { %v1047_v30 = vadd.f32 %v1046_v29, %v1045_v28 }
 0x136   : > { %v1048_v31 = vrot.slane %v1047_v30, 2 }
 0x138   : > { %v1049_v32 = vadd.f32 %v1048_v31, %v1047_v30 }
 0x13a   : > { %v1050_v34 = vrot.slane %v1049_v32, 1 }
 0x13c   : > { %v1051_v33 = vadd.f32 %v1050_v34, %v1049_v32 }
 0x13e   : > { %v1052_v36 = vmul.f32 0.25, %v1051_v33 }
 0x140   : > { %v1053_v35 = vsub.f32 %v1011_v63, %v1052_v36  ;;  %v1054_v37 = vsub.f32 %v1012_v7, %v1052_v36  ;;  %v1055_v38 = vsub.f32 %v1013_v21, %v1052_v36  ;;  %v1056_v39 = vsub.f32 %v1014_v24, %v1052_v36 }
 0x142   : > { %v1057_v40 = vmul.f32 %v1053_v35, %v1022_v46  ;;  %v1058_v41 = vmul.f32 %v1054_v37, %v1027_v1  ;;  %v1059_v42 = vmul.f32 %v1055_v38, %v1032_v16  ;;  %v1060_v43 = vmul.f32 %v1056_v39, %v1037_v25 }
 0x144   : > { %v1061_v44 = vmul.f32 %v1057_v40, %v1057_v40  ;;  %v1062_v45 = vmul.f32 %v1058_v41, %v1058_v41  ;;  %v1063_v47 = vmul.f32 %v1059_v42, %v1059_v42  ;;  %v1064_v49 = vmul.f32 %v1060_v43, %v1060_v43 }
 0x146   : > { %v1065_v48 = vadd.f32 %v1062_v45, %v1061_v44 }
 0x148   : > { %v1066_v50 = vadd.f32 %v1065_v48, %v1063_v47 }
 0x14a   : > { %v1067_v51 = vadd.f32 %v1066_v50, %v1064_v49 }
 0x14c   : > { %v1068_v52 = vrot.slane %v1067_v51, 4 }
 0x14e   : > { %v1069_v53 = vadd.f32 %v1068_v52, %v1067_v51 }
 0x150   : > { %v1070_v54 = vrot.slane %v1069_v53, 2 }
 0x152   : > { %v1071_v55 = vadd.f32 %v1070_v54, %v1069_v53 }
 0x154   : > { %v1072_v56 = vrot.slane %v1071_v55, 1 }
 0x156   : > { %v1073_v57 = vadd.f32 %v1072_v56, %v1071_v55 }
 0x158   : > { %v1074_v58 = vmul.f32 0.25, %v1073_v57 }
 0x15a   : > { %v1075_v59 = vadd.f32 1e-05, %v1074_v58 }
 0x15c   : > { %1549 = vrsqrt.f32 %v1075_v59 }
 0x166   : > { %v1550_v46 = vpop.eup %1549 }
 0x167   : > { %v1077_v60 = vmul.f32 %v1550_v46, %v1053_v35  ;;  %v1078_v61 = vmul.f32 %v1550_v46, %v1054_v37  ;;  %v1079_v62 = vmul.f32 %v1550_v46, %v1055_v38  ;;  %v1080_v63 = vmul.f32 %v1550_v46, %v1056_v39 }
 0x169   : > { %vm1081_vm0 = vcmp.ge.f32.partialorder %v1077_v60, 0.0  ;;  %vm1082_vm1 = vcmp.ge.f32.partialorder %v1078_v61, 0.0  ;;  %vm1083_vm2 = vcmp.ge.f32.partialorder %v1079_v62, 0.0  ;;  %vm1084_vm3 = vcmp.ge.f32.partialorder %v1080_v63, 0.0 }
 0x16a   : > { %v1085_v0 = vmul.f32 0.2, %v1077_v60  ;;  %v1086_v1 = vmul.f32 0.2, %v1078_v61  ;;  %v1087_v2 = vmul.f32 0.2, %v1079_v62 }
 0x16b   : > { %v1088_v3 = vmul.f32 0.2, %v1080_v63 }
 0x16c   : > { %v1089_v4 = vsel %vm1081_vm0, %v1077_v60, %v1085_v0  ;;  %v1090_v5 = vsel %vm1082_vm1, %v1078_v61, %v1086_v1  ;;  %v1091_v6 = vsel %vm1083_vm2, %v1079_v62, %v1087_v2 }
 0x16d   : > { %v1092_v7 = vsel %vm1084_vm3, %v1080_v63, %v1088_v3  ;;  %v1335_v8 = vpack.c.bf16 %v1090_v5, %v1089_v4 }
 0x16e   : > { %v1340_v9 = vpack.c.bf16 %v1092_v7, %v1091_v6 }
 0x16f   : > { %1336 = vst [vmem:[%s197_s20] sm:$0xff] %v1335_v8  }
 0x170   : > { %1342 = vst [vmem:[%s197_s20 + $0x8] sm:$0xff] %v1340_v9  }
 0x171 PF: > { %s14_s15 = sadd.s32 1, %s1557_s15  }
 0x172   : > { %p11_p4 = scmp.ge.s32.totalorder %s14_s15, 4  }
 0x174   :  { %13 = sbr.rel (!%p11_p4) target bundleno = 1 (0x1), region = 67 }

// kernel: discriminator_forward.7
= control target key start
LH: loop header
LB: loop body
LE: loop exit
PB: predicated region body
PF: predicated region fallthrough
CT: control target
= control target key end

     0   :  { %s2439_s15 = smov 0   ;;  %s2869_s0 = inlined_call_operand.vmem [shape: bf16[2,64,512], index: 0, kind: input, shape index: {}]   ;;  %s2870_s1 = inlined_call_operand.vmem [shape: bf16[4,512,128], index: 1, kind: input, shape index: {}]   ;;  %s2871_s2 = inlined_call_operand.vmem [shape: f32[1,128], index: 2, kind: input, shape index: {}]   ;;  %s2872_s3 = inlined_call_operand.vmem [shape: f32[16,1], index: 3, kind: input, shape index: {}]   ;;  %s2873_s4 = inlined_call_operand.vmem [shape: f32[2,16,128], index: 4, kind: output, shape index: {}]  }
   0x1 LB: > { %s1720_s16 = sadd.s32 4294967295, %s2412_s15   ;;  %p1724_p0 = scmp.ge.s32.totalorder %s2412_s15, 1  ;;  %s2412_s15 = sphi %s2439_s15, %s14_s15  }
   0x2   : > { %p162_p1 = scmp.lt.s32.totalorder %s2412_s15, 3 }
   0x4   : > { %p163_p2 = pnand %p1724_p0, %p162_p1 }
   0x5   : > { %v2254_v0 = vld [vmem:[%s2870_s1 + $0x140] sm:$0xff] (!%p163_p2)   ;;  %v2258_v4 = vld [vmem:[%s2870_s1 + $0x148] sm:$0xff] (!%p163_p2)   ;;  %v2262_v8 = vld [vmem:[%s2870_s1 + $0x150] sm:$0xff] (!%p163_p2)   ;;  %p188_p3 = scmp.lt.s32.totalorder (!%p163_p2), %s1720_s16, 1 }
   0x6   : > { %166 = sbr.rel (%p163_p2) target bundleno = 360 (0x168), region = 36  ;;  %v2255_v1 = vld [vmem:[%s2870_s1 + $0x1c0] sm:$0xff] (!%p163_p2)   ;;  %2070 = vmatprep.subr.bf16.mxu0 (!%p163_p2), %v2254_v0  ;;  %v2259_v5 = vld [vmem:[%s2870_s1 + $0x1c8] sm:$0xff] (!%p163_p2)   ;;  %v2263_v9 = vld [vmem:[%s2870_s1 + $0x1d0] sm:$0xff] (!%p163_p2)  }
   0x7   : > { %v2256_v2 = vld [vmem:[%s2870_s1 + $0x100] sm:$0xff] (!%p163_p2)   ;;  %2092 = vmatprep.subr.bf16.mxu1 (!%p163_p2), %v2255_v1  ;;  %v2260_v6 = vld [vmem:[%s2870_s1 + $0x108] sm:$0xff] (!%p163_p2)   ;;  %v2264_v10 = vld [vmem:[%s2870_s1 + $0x110] sm:$0xff] (!%p163_p2)  }
   0x8   : > { %v2257_v3 = vld [vmem:[%s2870_s1 + $0x180] sm:$0xff] (!%p163_p2)   ;;  %2071 = vmatpush3.bf16.msra.mxu0 (!%p163_p2), %v2256_v2  ;;  %v2261_v7 = vld [vmem:[%s2870_s1 + $0x188] sm:$0xff] (!%p163_p2)   ;;  %v2265_v11 = vld [vmem:[%s2870_s1 + $0x190] sm:$0xff] (!%p163_p2)  }
   0x9   : > { %2093 = vmatpush3.bf16.msra.mxu1 (!%p163_p2), %v2257_v3  ;;  %2072 = vmatprep.subr.bf16.mxu0 (!%p163_p2), %v2258_v4  ;;  %v2266_v12 = vld [vmem:[%s2870_s1 + $0x158] sm:$0xff] (!%p163_p2)   ;;  %v2270_v16 = vld [vmem:[%s2870_s1 + $0x160] sm:$0xff] (!%p163_p2)   ;;  %v2274_v20 = vld [vmem:[%s2870_s1 + $0x168] sm:$0xff] (!%p163_p2)  }
   0xa   : > { %2094 = vmatprep.subr.bf16.mxu1 (!%p163_p2), %v2259_v5  ;;  %v2267_v13 = vld [vmem:[%s2870_s1 + $0x1d8] sm:$0xff] (!%p163_p2)   ;;  %v2271_v17 = vld [vmem:[%s2870_s1 + $0x1e0] sm:$0xff] (!%p163_p2)   ;;  %v2275_v21 = vld [vmem:[%s2870_s1 + $0x1e8] sm:$0xff] (!%p163_p2)  }
   0xb   : > { %v2268_v14 = vld [vmem:[%s2870_s1 + $0x118] sm:$0xff] (!%p163_p2)   ;;  %v2272_v18 = vld [vmem:[%s2870_s1 + $0x120] sm:$0xff] (!%p163_p2)   ;;  %v2276_v22 = vld [vmem:[%s2870_s1 + $0x128] sm:$0xff] (!%p163_p2)  }
   0xc   : > { %2073 = vmatpush3.bf16.msra.mxu0 (!%p163_p2), %v2260_v6  ;;  %v2269_v15 = vld [vmem:[%s2870_s1 + $0x198] sm:$0xff] (!%p163_p2)   ;;  %v2273_v19 = vld [vmem:[%s2870_s1 + $0x1a0] sm:$0xff] (!%p163_p2)   ;;  %v2277_v23 = vld [vmem:[%s2870_s1 + $0x1a8] sm:$0xff] (!%p163_p2)  }
   0xd   : > { %2095 = vmatpush3.bf16.msra.mxu1 %v2261_v7  ;;  %2074 = vmatprep.subr.bf16.mxu0 %v2262_v8  ;;  %s2875_s16 = smov (!%p188_p3, %s1720_s16), 1  ;;  %v2278_v24 = vld [vmem:[%s2870_s1 + $0x170] sm:$0xff]   ;;  %v2282_v28 = vld [vmem:[%s2870_s1 + $0x178] sm:$0xff]   ;;  %v2292_v36 = vld [vmem:[%s2870_s1 + $0x40] sm:$0xff]  }
   0xe   : > { %2096 = vmatprep.subr.bf16.mxu1 %v2263_v9  ;;  %v2279_v25 = vld [vmem:[%s2870_s1 + $0x1f0] sm:$0xff]   ;;  %s2068_s20 = sshll.u32 %s2875_s16, 7  ;;  %v2283_v29 = vld [vmem:[%s2870_s1 + $0x1f8] sm:$0xff]   ;;  %v2293_v37 = vld [vmem:[%s2870_s1 + $0xc0] sm:$0xff]  }
   0xf   : > { %v2280_v26 = vld [vmem:[%s2870_s1 + $0x130] sm:$0xff]   ;;  %s2547_s29 = scalar_lea.vmem %s2869_s0, %s2068_s20  ;;  %v2284_v30 = vld [vmem:[%s2870_s1 + $0x138] sm:$0xff]   ;;  %v2294_v38 = vld [vmem:[%s2870_s1] sm:$0xff]  }
  0x10   : > { %2075 = vmatpush3.bf16.msra.mxu0 %v2264_v10  ;;  %v2281_v27 = vld [vmem:[%s2870_s1 + $0x1b0] sm:$0xff]   ;;  %v2285_v31 = vld [vmem:[%s2870_s1 + $0x1b8] sm:$0xff]   ;;  %v2295_v39 = vld [vmem:[%s2870_s1 + $0x80] sm:$0xff]  }
  0x11   : > { %2097 = vmatpush3.bf16.msra.mxu1 %v2265_v11  ;;  %2076 = vmatprep.subr.bf16.mxu0 %v2266_v12  ;;  %v2286_v32 = vld [vmem:[%s2547_s29 + $0x20] ss:$16 sps:$4 sm:$0xff]   ;;  %v2288_v33 = vld [vmem:[%s2547_s29 + $0x24] ss:$16 sps:$4 sm:$0xff]   ;;  %v2289_v34 = vld [vmem:[%s2547_s29 + $0x28] ss:$16 sps:$4 sm:$0xff]  }
  0x12   : > { %2098 = vmatprep.subr.bf16.mxu1 %v2267_v13  ;;  %v2291_v35 = vld [vmem:[%s2547_s29 + $0x2c] ss:$16 sps:$4 sm:$0xff]   ;;  %580 = vmatprep.mubr.bf16.mxu0 %v2288_v33  ;;  %v2300_v44 = vld [vmem:[%s2870_s1 + $0x50] sm:$0xff]   ;;  %v2308_v52 = vld [vmem:[%s2870_s1 + $0x60] sm:$0xff]  }
  0x13   : > { %621 = vmatprep.mubr.bf16.mxu1 %v2291_v35  ;;  %v2296_v40 = vld [vmem:[%s2870_s1 + $0x48] sm:$0xff]   ;;  %v2301_v45 = vld [vmem:[%s2870_s1 + $0xd0] sm:$0xff]   ;;  %v2304_v48 = vld [vmem:[%s2870_s1 + $0x58] sm:$0xff]  }
  0x14   : > { %2077 = vmatpush3.bf16.msra.mxu0 %v2268_v14  ;;  %v2297_v41 = vld [vmem:[%s2870_s1 + $0xc8] sm:$0xff]   ;;  %v2302_v46 = vld [vmem:[%s2870_s1 + $0x10] sm:$0xff]   ;;  %v2305_v49 = vld [vmem:[%s2870_s1 + $0xd8] sm:$0xff]  }
  0x15   : > { %2099 = vmatpush3.bf16.msra.mxu1 %v2269_v15  ;;  %2078 = vmatprep.subr.bf16.mxu0 %v2270_v16  ;;  %v2298_v42 = vld [vmem:[%s2870_s1 + $0x8] sm:$0xff]   ;;  %v2303_v47 = vld [vmem:[%s2870_s1 + $0x90] sm:$0xff]   ;;  %v2306_v50 = vld [vmem:[%s2870_s1 + $0x18] sm:$0xff]  }
  0x16   : > { %2100 = vmatprep.subr.bf16.mxu1 %v2271_v17  ;;  %v2299_v43 = vld [vmem:[%s2870_s1 + $0x88] sm:$0xff]   ;;  %v2307_v51 = vld [vmem:[%s2870_s1 + $0x98] sm:$0xff]   ;;  %v2309_v53 = vld [vmem:[%s2870_s1 + $0xe0] sm:$0xff]  }
  0x17   : > { %v2310_v54 = vld [vmem:[%s2870_s1 + $0x20] sm:$0xff]   ;;  %v2312_v56 = vld [vmem:[%s2870_s1 + $0x68] sm:$0xff]   ;;  %v2316_v60 = vld [vmem:[%s2870_s1 + $0x70] sm:$0xff]  }
  0x18   : > { %2079 = vmatpush3.bf16.msra.mxu0 %v2272_v18  ;;  %v2311_v55 = vld [vmem:[%s2870_s1 + $0xa0] sm:$0xff]   ;;  %v2313_v57 = vld [vmem:[%s2870_s1 + $0xe8] sm:$0xff]   ;;  %v2317_v61 = vld [vmem:[%s2870_s1 + $0xf0] sm:$0xff]  }
  0x19   : > { %2101 = vmatpush3.bf16.msra.mxu1 %v2273_v19  ;;  %2080 = vmatprep.subr.bf16.mxu0 %v2274_v20  ;;  %v2314_v58 = vld [vmem:[%s2870_s1 + $0x28] sm:$0xff]   ;;  %v2318_v62 = vld [vmem:[%s2870_s1 + $0x30] sm:$0xff]   ;;  %v2320_v0 = vld [vmem:[%s2870_s1 + $0x78] sm:$0xff]  }
  0x1a   : > { %2102 = vmatprep.subr.bf16.mxu1 %v2275_v21  ;;  %v2315_v59 = vld [vmem:[%s2870_s1 + $0xa8] sm:$0xff]   ;;  %v2319_v63 = vld [vmem:[%s2870_s1 + $0xb0] sm:$0xff]   ;;  %v2321_v1 = vld [vmem:[%s2870_s1 + $0xf8] sm:$0xff]  }
  0x1b   : > { %v2322_v2 = vld [vmem:[%s2870_s1 + $0x38] sm:$0xff]   ;;  %v2324_v4 = vld [vmem:[%s2547_s29] ss:$16 sps:$4 sm:$0xff]   ;;  %v2326_v5 = vld [vmem:[%s2547_s29 + $0x4] ss:$16 sps:$4 sm:$0xff]  }
  0x1c   : > { %2081 = vmatpush3.bf16.msra.mxu0 %v2276_v22  ;;  %v2323_v3 = vld [vmem:[%s2870_s1 + $0xb8] sm:$0xff]   ;;  %v2330_v8 = vld [vmem:[%s2870_s1 + $0x240] sm:$0xff]   ;;  %v2334_v12 = vld [vmem:[%s2870_s1 + $0x248] sm:$0xff]  }
  0x1d   : > { %2103 = vmatpush3.bf16.msra.mxu1 %v2277_v23  ;;  %2082 = vmatprep.subr.bf16.mxu0 %v2278_v24  ;;  %v2327_v6 = vld [vmem:[%s2547_s29 + $0x8] ss:$16 sps:$4 sm:$0xff]   ;;  %v2329_v7 = vld [vmem:[%s2547_s29 + $0xc] ss:$16 sps:$4 sm:$0xff]   ;;  %v2331_v9 = vld [vmem:[%s2870_s1 + $0x2c0] sm:$0xff]  }
  0x1e   : > { %2104 = vmatprep.subr.bf16.mxu1 %v2279_v25  ;;  %v2332_v10 = vld [vmem:[%s2870_s1 + $0x200] sm:$0xff]   ;;  %v2335_v13 = vld [vmem:[%s2870_s1 + $0x2c8] sm:$0xff]   ;;  %v2338_v16 = vld [vmem:[%s2870_s1 + $0x250] sm:$0xff]  }
  0x1f   : > { %v2333_v11 = vld [vmem:[%s2870_s1 + $0x280] sm:$0xff]   ;;  %v2336_v14 = vld [vmem:[%s2870_s1 + $0x208] sm:$0xff]   ;;  %v2339_v17 = vld [vmem:[%s2870_s1 + $0x2d0] sm:$0xff]  }
  0x20   : > { %2083 = vmatpush3.bf16.msra.mxu0 %v2280_v26  ;;  %v2337_v15 = vld [vmem:[%s2870_s1 + $0x288] sm:$0xff]   ;;  %v2340_v18 = vld [vmem:[%s2870_s1 + $0x210] sm:$0xff]   ;;  %v2342_v20 = vld [vmem:[%s2870_s1 + $0x258] sm:$0xff]  }
  0x21   : > { %2105 = vmatpush3.bf16.msra.mxu1 %v2281_v27  ;;  %2084 = vmatprep.subr.bf16.mxu0 %v2282_v28  ;;  %v2341_v19 = vld [vmem:[%s2870_s1 + $0x290] sm:$0xff]   ;;  %v2343_v21 = vld [vmem:[%s2870_s1 + $0x2d8] sm:$0xff]   ;;  %v2346_v24 = vld [vmem:[%s2870_s1 + $0x260] sm:$0xff]  }
  0x22   : > { %2106 = vmatprep.subr.bf16.mxu1 %v2283_v29  ;;  %v2344_v22 = vld [vmem:[%s2870_s1 + $0x218] sm:$0xff]   ;;  %v2347_v25 = vld [vmem:[%s2870_s1 + $0x2e0] sm:$0xff]   ;;  %v2350_v28 = vld [vmem:[%s2870_s1 + $0x268] sm:$0xff]  }
  0x23   : > { %v2345_v23 = vld [vmem:[%s2870_s1 + $0x298] sm:$0xff]   ;;  %v2348_v26 = vld [vmem:[%s2870_s1 + $0x220] sm:$0xff]   ;;  %v2351_v29 = vld [vmem:[%s2870_s1 + $0x2e8] sm:$0xff]  }
  0x24   : > { %2085 = vmatpush3.bf16.msra.mxu0 %v2284_v30  ;;  %v2349_v27 = vld [vmem:[%s2870_s1 + $0x2a0] sm:$0xff]   ;;  %v2352_v30 = vld [vmem:[%s2870_s1 + $0x228] sm:$0xff]   ;;  %v2355_v33 = vld [vmem:[%s2870_s1 + $0x2f0] sm:$0xff]  }
  0x25   : > { %2107 = vmatpush3.bf16.msra.mxu1 %v2285_v31  ;;  %2114 = vmatprep.subr.bf16.mxu0 %v2292_v36  ;;  %v2353_v31 = vld [vmem:[%s2870_s1 + $0x2a8] sm:$0xff]   ;;  %v2357_v35 = vld [vmem:[%s2870_s1 + $0x2b0] sm:$0xff]   ;;  %v2358_v36 = vld [vmem:[%s2870_s1 + $0x278] sm:$0xff]  }
  0x26   : > { %2136 = vmatprep.subr.bf16.mxu1 %v2293_v37  ;;  %v2359_v37 = vld [vmem:[%s2870_s1 + $0x2f8] sm:$0xff]  }
  0x27   : > { %581 = vmatmul.mubr.bf16.vlgmr.msra.gmra.mrb[0].mxu0 %v2286_v32  ;;  %v2354_v32 = vld [vmem:[%s2870_s1 + $0x270] sm:$0xff]  }
  0x28   : > { %622 = vmatmul.mubr.bf16.vlgmr.msra.gmra.mrb[0].mxu1 %v2289_v34  ;;  %2115 = vmatpush3.bf16.msra.mxu0 %v2294_v38  ;;  %v2356_v34 = vld [vmem:[%s2870_s1 + $0x230] sm:$0xff]   ;;  %v2360_v38 = vld [vmem:[%s2870_s1 + $0x238] sm:$0xff]  }
  0x29   : > { %2137 = vmatpush3.bf16.msra.mxu1 %v2295_v39  ;;  %2116 = vmatprep.subr.bf16.mxu0 %v2296_v40  ;;  %v2361_v39 = vld [vmem:[%s2870_s1 + $0x2b8] sm:$0xff]   ;;  %v2362_v40 = vld [vmem:[%s2547_s29 + $0x40] ss:$16 sps:$4 sm:$0xff]  }
  0x2a   : > { %2138 = vmatprep.subr.bf16.mxu1 %v2297_v41  ;;  %874 = vmatprep.mubr.bf16.mxu0 %v2326_v5  ;;  %v2364_v41 = vld [vmem:[%s2547_s29 + $0x44] ss:$16 sps:$4 sm:$0xff]  }
  0x2b   : > { %915 = vmatprep.mubr.bf16.mxu1 %v2329_v7  ;;  %v2393_v5 = vld [vmem:[%s2870_s1 + $0x3f0] sm:$0xff]  }
  0x2c   : > { %2117 = vmatpush3.bf16.msra.mxu0 %v2298_v42  ;;  %v2365_v42 = vld [vmem:[%s2547_s29 + $0x48] ss:$16 sps:$4 sm:$0xff]   ;;  %v2395_v7 = vld [vmem:[%s2870_s1 + $0x3b0] sm:$0xff]  }
  0x2d   : > { %2139 = vmatpush3.bf16.msra.mxu1 %v2299_v43  ;;  %2118 = vmatprep.subr.bf16.mxu0 %v2300_v44  ;;  %v2367_v43 = vld [vmem:[%s2547_s29 + $0x4c] ss:$16 sps:$4 sm:$0xff]   ;;  %v2368_v44 = vld [vmem:[%s2870_s1 + $0x340] sm:$0xff]  }
  0x2e   : > { %2140 = vmatprep.subr.bf16.mxu1 %v2301_v45  ;;  %v2369_v45 = vld [vmem:[%s2870_s1 + $0x3c0] sm:$0xff]  }
  0x30   : > { %2119 = vmatpush3.bf16.msra.mxu0 %v2302_v46  ;;  %v2370_v46 = vld [vmem:[%s2870_s1 + $0x300] sm:$0xff]  }
  0x31   : > { %2141 = vmatpush3.bf16.msra.mxu1 %v2303_v47  ;;  %2120 = vmatprep.subr.bf16.mxu0 %v2304_v48  ;;  %v2371_v47 = vld [vmem:[%s2870_s1 + $0x380] sm:$0xff]   ;;  %v2372_v48 = vld [vmem:[%s2870_s1 + $0x348] sm:$0xff]  }
  0x32   : > { %2142 = vmatprep.subr.bf16.mxu1 %v2305_v49  ;;  %v2373_v49 = vld [vmem:[%s2870_s1 + $0x3c8] sm:$0xff]  }
  0x34   : > { %2121 = vmatpush3.bf16.msra.mxu0 %v2306_v50  ;;  %v2374_v50 = vld [vmem:[%s2870_s1 + $0x308] sm:$0xff]  }
  0x35   : > { %2143 = vmatpush3.bf16.msra.mxu1 %v2307_v51  ;;  %2122 = vmatprep.subr.bf16.mxu0 %v2308_v52  ;;  %v2375_v51 = vld [vmem:[%s2870_s1 + $0x388] sm:$0xff]   ;;  %v2376_v52 = vld [vmem:[%s2870_s1 + $0x350] sm:$0xff]  }
  0x36   : > { %2144 = vmatprep.subr.bf16.mxu1 %v2309_v53  ;;  %v2377_v53 = vld [vmem:[%s2870_s1 + $0x3d0] sm:$0xff]  }
  0x38   : > { %2123 = vmatpush3.bf16.msra.mxu0 %v2310_v54  ;;  %v2378_v54 = vld [vmem:[%s2870_s1 + $0x310] sm:$0xff]  }
  0x39   : > { %2145 = vmatpush3.bf16.msra.mxu1 %v2311_v55  ;;  %2124 = vmatprep.subr.bf16.mxu0 %v2312_v56  ;;  %v2379_v55 = vld [vmem:[%s2870_s1 + $0x390] sm:$0xff]   ;;  %v2380_v56 = vld [vmem:[%s2870_s1 + $0x358] sm:$0xff]  }
  0x3a   : > { %2146 = vmatprep.subr.bf16.mxu1 %v2313_v57  ;;  %v2381_v57 = vld [vmem:[%s2870_s1 + $0x3d8] sm:$0xff]  }
  0x3c   : > { %2125 = vmatpush3.bf16.msra.mxu0 %v2314_v58  ;;  %v2382_v58 = vld [vmem:[%s2870_s1 + $0x318] sm:$0xff]  }
  0x3d   : > { %2147 = vmatpush3.bf16.msra.mxu1 %v2315_v59  ;;  %2126 = vmatprep.subr.bf16.mxu0 %v2316_v60  ;;  %v2383_v59 = vld [vmem:[%s2870_s1 + $0x398] sm:$0xff]   ;;  %v2384_v60 = vld [vmem:[%s2870_s1 + $0x360] sm:$0xff]  }
  0x3e   : > { %2148 = vmatprep.subr.bf16.mxu1 %v2317_v61  ;;  %v2385_v61 = vld [vmem:[%s2870_s1 + $0x3e0] sm:$0xff]  }
  0x40   : > { %2127 = vmatpush3.bf16.msra.mxu0 %v2318_v62  ;;  %v2386_v62 = vld [vmem:[%s2870_s1 + $0x320] sm:$0xff]  }
  0x41   : > { %2149 = vmatpush3.bf16.msra.mxu1 %v2319_v63  ;;  %2128 = vmatprep.subr.bf16.mxu0 %v2320_v0  ;;  %v2387_v63 = vld [vmem:[%s2870_s1 + $0x3a0] sm:$0xff]   ;;  %v2388_v0 = vld [vmem:[%s2870_s1 + $0x368] sm:$0xff]  }
  0x42   : > { %2150 = vmatprep.subr.bf16.mxu1 %v2321_v1  ;;  %v2389_v1 = vld [vmem:[%s2870_s1 + $0x3e8] sm:$0xff]  }
  0x44   : > { %2129 = vmatpush3.bf16.msra.mxu0 %v2322_v2  ;;  %v2390_v2 = vld [vmem:[%s2870_s1 + $0x328] sm:$0xff]  }
  0x45   : > { %2151 = vmatpush3.bf16.msra.mxu1 %v2323_v3  ;;  %2158 = vmatprep.subr.bf16.mxu0 %v2330_v8  ;;  %v2391_v3 = vld [vmem:[%s2870_s1 + $0x3a8] sm:$0xff]   ;;  %v2396_v8 = vld [vmem:[%s2870_s1 + $0x378] sm:$0xff]  }
  0x46   : > { %2180 = vmatprep.subr.bf16.mxu1 %v2331_v9  ;;  %v2397_v9 = vld [vmem:[%s2870_s1 + $0x3f8] sm:$0xff]  }
  0x47   : > { %875 = vmatmul.mubr.bf16.vlgmr.msra.gmra.mrb[4].mxu0 %v2324_v4  ;;  %v2392_v4 = vld [vmem:[%s2870_s1 + $0x370] sm:$0xff]  }
  0x48   : > { %916 = vmatmul.mubr.bf16.vlgmr.msra.gmra.mrb[4].mxu1 %v2327_v6  ;;  %2159 = vmatpush3.bf16.msra.mxu0 %v2332_v10  ;;  %v2394_v6 = vld [vmem:[%s2870_s1 + $0x330] sm:$0xff]   ;;  %v2398_v10 = vld [vmem:[%s2870_s1 + $0x338] sm:$0xff]  }
  0x49   : > { %2181 = vmatpush3.bf16.msra.mxu1 %v2333_v11  ;;  %2160 = vmatprep.subr.bf16.mxu0 %v2334_v12  ;;  %v2399_v11 = vld [vmem:[%s2870_s1 + $0x3b8] sm:$0xff]   ;;  %v2400_v12 = vld [vmem:[%s2547_s29 + $0x60] ss:$16 sps:$4 sm:$0xff]  }
  0x4a   : > { %2182 = vmatprep.subr.bf16.mxu1 %v2335_v13  ;;  %1237 = vmatprep.mubr.bf16.mxu0 %v2364_v41  ;;  %v2402_v13 = vld [vmem:[%s2547_s29 + $0x64] ss:$16 sps:$4 sm:$0xff]  }
  0x4b   : > { %1278 = vmatprep.mubr.bf16.mxu1 %v2367_v43 }
  0x4c   : > { %2161 = vmatpush3.bf16.msra.mxu0 %v2336_v14  ;;  %v2403_v14 = vld [vmem:[%s2547_s29 + $0x68] ss:$16 sps:$4 sm:$0xff]  }
  0x4d   : > { %2183 = vmatpush3.bf16.msra.mxu1 %v2337_v15  ;;  %2162 = vmatprep.subr.bf16.mxu0 %v2338_v16  ;;  %v2405_v15 = vld [vmem:[%s2547_s29 + $0x6c] ss:$16 sps:$4 sm:$0xff]   ;;  %s2069_s29 = sshll.u32 %s2875_s16, 4 }
  0x4e   : > { %2184 = vmatprep.subr.bf16.mxu1 %v2339_v17  ;;  %s197_s12 = scalar_lea.vmem %s2873_s4, %s2069_s29 }
  0x50   : > { %2163 = vmatpush3.bf16.msra.mxu0 %v2340_v18 }
  0x51   : > { %2185 = vmatpush3.bf16.msra.mxu1 %v2341_v19  ;;  %2164 = vmatprep.subr.bf16.mxu0 %v2342_v20 }
  0x52   : > { %2186 = vmatprep.subr.bf16.mxu1 %v2343_v21 }
  0x54   : > { %2165 = vmatpush3.bf16.msra.mxu0 %v2344_v22 }
  0x55   : > { %2187 = vmatpush3.bf16.msra.mxu1 %v2345_v23  ;;  %2166 = vmatprep.subr.bf16.mxu0 %v2346_v24 }
  0x56   : > { %2188 = vmatprep.subr.bf16.mxu1 %v2347_v25 }
  0x58   : > { %2167 = vmatpush3.bf16.msra.mxu0 %v2348_v26 }
  0x59   : > { %2189 = vmatpush3.bf16.msra.mxu1 %v2349_v27  ;;  %2168 = vmatprep.subr.bf16.mxu0 %v2350_v28 }
  0x5a   : > { %2190 = vmatprep.subr.bf16.mxu1 %v2351_v29 }
  0x5c   : > { %2169 = vmatpush3.bf16.msra.mxu0 %v2352_v30 }
  0x5d   : > { %2191 = vmatpush3.bf16.msra.mxu1 %v2353_v31  ;;  %2170 = vmatprep.subr.bf16.mxu0 %v2354_v32 }
  0x5e   : > { %2192 = vmatprep.subr.bf16.mxu1 %v2355_v33 }
  0x60   : > { %2171 = vmatpush3.bf16.msra.mxu0 %v2356_v34 }
  0x61   : > { %2193 = vmatpush3.bf16.msra.mxu1 %v2357_v35  ;;  %2172 = vmatprep.subr.bf16.mxu0 %v2358_v36 }
  0x62   : > { %2194 = vmatprep.subr.bf16.mxu1 %v2359_v37 }
  0x64   : > { %2173 = vmatpush3.bf16.msra.mxu0 %v2360_v38 }
  0x65   : > { %2195 = vmatpush3.bf16.msra.mxu1 %v2361_v39  ;;  %2202 = vmatprep.subr.bf16.mxu0 %v2368_v44 }
  0x66   : > { %2224 = vmatprep.subr.bf16.mxu1 %v2369_v45 }
  0x67   : > { %1238 = vmatmul.mubr.bf16.vlgmr.msra.gmra.mrb[8].mxu0 %v2362_v40 }
  0x68   : > { %1279 = vmatmul.mubr.bf16.vlgmr.msra.gmra.mrb[8].mxu1 %v2365_v42  ;;  %2203 = vmatpush3.bf16.msra.mxu0 %v2370_v46 }
  0x69   : > { %2225 = vmatpush3.bf16.msra.mxu1 %v2371_v47  ;;  %2204 = vmatprep.subr.bf16.mxu0 %v2372_v48 }
  0x6a   : > { %2226 = vmatprep.subr.bf16.mxu1 %v2373_v49  ;;  %1602 = vmatprep.mubr.bf16.mxu0 %v2402_v13 }
  0x6b   : > { %1643 = vmatprep.mubr.bf16.mxu1 %v2405_v15 }
  0x6c   : > { %2205 = vmatpush3.bf16.msra.mxu0 %v2374_v50 }
  0x6d   : > { %2227 = vmatpush3.bf16.msra.mxu1 %v2375_v51  ;;  %2206 = vmatprep.subr.bf16.mxu0 %v2376_v52 }
  0x6e   : > { %2228 = vmatprep.subr.bf16.mxu1 %v2377_v53 }
  0x70   : > { %2207 = vmatpush3.bf16.msra.mxu0 %v2378_v54 }
  0x71   : > { %2229 = vmatpush3.bf16.msra.mxu1 %v2379_v55  ;;  %2208 = vmatprep.subr.bf16.mxu0 %v2380_v56 }
  0x72   : > { %2230 = vmatprep.subr.bf16.mxu1 %v2381_v57 }
  0x74   : > { %2209 = vmatpush3.bf16.msra.mxu0 %v2382_v58 }
  0x75   : > { %2231 = vmatpush3.bf16.msra.mxu1 %v2383_v59  ;;  %2210 = vmatprep.subr.bf16.mxu0 %v2384_v60 }
  0x76   : > { %2232 = vmatprep.subr.bf16.mxu1 %v2385_v61 }
  0x78   : > { %2211 = vmatpush3.bf16.msra.mxu0 %v2386_v62 }
  0x79   : > { %2233 = vmatpush3.bf16.msra.mxu1 %v2387_v63  ;;  %2212 = vmatprep.subr.bf16.mxu0 %v2388_v0 }
  0x7a   : > { %2234 = vmatprep.subr.bf16.mxu1 %v2389_v1 }
  0x7c   : > { %2213 = vmatpush3.bf16.msra.mxu0 %v2390_v2 }
  0x7d   : > { %2235 = vmatpush3.bf16.msra.mxu1 %v2391_v3  ;;  %2214 = vmatprep.subr.bf16.mxu0 %v2392_v4 }
  0x7e   : > { %2236 = vmatprep.subr.bf16.mxu1 %v2393_v5 }
  0x80   : > { %2215 = vmatpush3.bf16.msra.mxu0 %v2394_v6 }
  0x81   : > { %2237 = vmatpush3.bf16.msra.mxu1 %v2395_v7  ;;  %2216 = vmatprep.subr.bf16.mxu0 %v2396_v8 }
  0x82   : > { %2238 = vmatprep.subr.bf16.mxu1 %v2397_v9 }
  0x84   : > { %2217 = vmatpush3.bf16.msra.mxu0 %v2398_v10 }
  0x85   : > { %2239 = vmatpush3.bf16.msra.mxu1 %v2399_v11  ;;  %v2065_v11 = vld [vmem:[%s2871_s2] ss:$0 sm:$0xff] }
  0x87   : > { %1603 = vmatmul.mubr.bf16.vlgmr.msra.gmra.mrb[12].mxu0 %v2400_v12 }
  0x88   : > { %1644 = vmatmul.mubr.bf16.vlgmr.msra.gmra.mrb[12].mxu1 %v2403_v14 }
  0xfa   : > { %v2086_v16 = vpop.f32.mrb[0].mxu0 }
  0xfb   : > { %v2108_v17 = vpop.f32.mrb[0].mxu1  ;;  %v2087_v18 = vpop.f32.mrb[1].mxu0 }
  0xfc   : > { %v2088_v19 = vadd.f32 %v2087_v18, %v2086_v16  ;;  %v2109_v20 = vpop.f32.mrb[1].mxu1  ;;  %v2089_v21 = vpop.f32.mrb[2].mxu0 }
  0xfd   : > { %v2110_v22 = vadd.f32 %v2109_v20, %v2108_v17  ;;  %v2111_v23 = vpop.f32.mrb[2].mxu1  ;;  %v2090_v24 = vpop.f32.mrb[3].mxu0 }
  0xfe   : > { %v2091_v25 = vadd.f32 %v2090_v24, %v2089_v21  ;;  %v2112_v26 = vpop.f32.mrb[3].mxu1 }
  0xff   : > { %v624_v27 = vadd.f32 %v2110_v22, %v2088_v19  ;;  %v2113_v28 = vadd.f32 %v2112_v26, %v2111_v23 }
 0x101   : > { %v627_v29 = vadd.f32 %v2113_v28, %v2091_v25 }
 0x11a   : > { %v2130_v30 = vpop.f32.mrb[4].mxu0 }
 0x11b   : > { %v2131_v31 = vpop.f32.mrb[5].mxu0  ;;  %v2152_v32 = vpop.f32.mrb[4].mxu1 }
 0x11c   : > { %v2132_v33 = vadd.f32 %v2131_v31, %v2130_v30  ;;  %v2133_v34 = vpop.f32.mrb[6].mxu0  ;;  %v2153_v35 = vpop.f32.mrb[5].mxu1 }
 0x11d   : > { %v2134_v36 = vpop.f32.mrb[7].mxu0  ;;  %v2154_v38 = vadd.f32 %v2153_v35, %v2152_v32  ;;  %v2155_v39 = vpop.f32.mrb[6].mxu1 }
 0x11e   : > { %v877_v37 = vadd.f32 %v2132_v33, %v624_v27  ;;  %v2135_v40 = vadd.f32 %v2134_v36, %v2133_v34  ;;  %v2156_v41 = vpop.f32.mrb[7].mxu1 }
 0x11f   : > { %v2157_v44 = vadd.f32 %v2156_v41, %v2155_v39 }
 0x120   : > { %v918_v42 = vadd.f32 %v2154_v38, %v877_v37  ;;  %v880_v43 = vadd.f32 %v2135_v40, %v627_v29 }
 0x122   : > { %v921_v45 = vadd.f32 %v2157_v44, %v880_v43 }
 0x13a   : > { %v2174_v46 = vpop.f32.mrb[8].mxu0 }
 0x13b   : > { %v2196_v47 = vpop.f32.mrb[8].mxu1  ;;  %v2175_v48 = vpop.f32.mrb[9].mxu0 }
 0x13c   : > { %v2176_v49 = vadd.f32 %v2175_v48, %v2174_v46  ;;  %v2197_v50 = vpop.f32.mrb[9].mxu1  ;;  %v2177_v51 = vpop.f32.mrb[10].mxu0 }
 0x13d   : > { %v2198_v52 = vadd.f32 %v2197_v50, %v2196_v47  ;;  %v2199_v53 = vpop.f32.mrb[10].mxu1  ;;  %v2178_v54 = vpop.f32.mrb[11].mxu0 }
 0x13e   : > { %v2179_v55 = vadd.f32 %v2178_v54, %v2177_v51  ;;  %v2200_v56 = vpop.f32.mrb[11].mxu1 }
 0x13f   : > { %v1281_v57 = vadd.f32 %v2198_v52, %v2176_v49  ;;  %v2201_v58 = vadd.f32 %v2200_v56, %v2199_v53 }
 0x141   : > { %v1287_v59 = vadd.f32 %v1281_v57, %v918_v42  ;;  %v1284_v60 = vadd.f32 %v2201_v58, %v2179_v55 }
 0x143   : > { %v1288_v61 = vadd.f32 %v1284_v60, %v921_v45 }
 0x15a   : > { %v2218_v62 = vpop.f32.mrb[12].mxu0 }
 0x15b   : > { %v2240_v63 = vpop.f32.mrb[12].mxu1  ;;  %v2219_v0 = vpop.f32.mrb[13].mxu0 }
 0x15c   : > { %v2220_v1 = vadd.f32 %v2219_v0, %v2218_v62  ;;  %v2241_v2 = vpop.f32.mrb[13].mxu1  ;;  %v2221_v3 = vpop.f32.mrb[14].mxu0 }
 0x15d   : > { %v2242_v4 = vadd.f32 %v2241_v2, %v2240_v63  ;;  %v2243_v5 = vpop.f32.mrb[14].mxu1  ;;  %v2222_v6 = vpop.f32.mrb[15].mxu0 }
 0x15e   : > { %v2223_v7 = vadd.f32 %v2222_v6, %v2221_v3  ;;  %v2244_v8 = vpop.f32.mrb[15].mxu1 }
 0x15f   : > { %v1646_v9 = vadd.f32 %v2242_v4, %v2220_v1  ;;  %v2245_v10 = vadd.f32 %v2244_v8, %v2243_v5 }
 0x161   : > { %v1652_v12 = vadd.f32 %v1646_v9, %v1287_v59  ;;  %v1649_v13 = vadd.f32 %v2245_v10, %v2223_v7 }
 0x163   : > { %v1661_v14 = vadd.f32 %v2065_v11, %v1652_v12  ;;  %v1653_v15 = vadd.f32 %v1649_v13, %v1288_v61 }
 0x165   : > { %1663 = vst [vmem:[%s197_s12] sm:$0xff] %v1661_v14  ;;  %v1662_v16 = vadd.f32 %v2065_v11, %v1653_v15 }
 0x167   : > { %1664 = vst [vmem:[%s197_s12 + $0x8] sm:$0xff] %v1662_v16 }
 0x168 PF: > { %s14_s15 = sadd.s32 1, %s2412_s15  }
 0x169   : > { %p11_p4 = scmp.ge.s32.totalorder %s14_s15, 4  }
 0x16b   :  { %13 = sbr.rel (!%p11_p4) target bundleno = 1 (0x1), region = 69 }

</bundles_post_ra>
